<compile_context>
chip_gen: v7x
topology: tpu7x:2x2x1
jax: 0.10.0
libtpu: 0.0.40
codegen_flags: <defaults>
</compile_context>

<pallas_src>
import jax
import jax.numpy as jnp
from jax import lax
from jax.experimental import pallas as pl
from jax.experimental.pallas import tpu as pltpu

# ---------------- problem sizes (small, consistent with the module) ----------
B = 2        # batch
T = 8        # question seq length
E = 32       # word-embedding dim
H = 32       # num_hid
K = 4        # num_objs
V = 16       # v_dim (obj feature dim)
A = 10       # number of answer classes
NTOKEN = 50  # vocab size

LANES = 128      # lane width; every slab / activation row is padded to this
NTOK_PAD = 56    # NTOKEN rounded up to a multiple of 8 (one-hot contraction length)

# ---------------- weight-slab (bf16) row layout: offsets multiples of 16 -----
GI_OFF   = 0      # precomputed emb_table @ w_ih   [NTOKEN, 3H]   (56 rows used)
WHH_OFF  = 64     # w_hh                           [H, 3H]
WATT_OFF = 96     # [wv_att ; wq_att]              [V+H, H]
WNET_OFF = 144    # [wq_net ; wv_net]              [H+V, H]
WC1_OFF  = 192    # wc1                            [H, 2H]
WC2_OFF  = 224    # wc2                            [2H, A]
W_ROWS   = 288    # 288 x 128 x bf16  ~ 72 KB

# ---------------- bias-slab (f32) rows ---------------------------------------
(B_GI, B_HN, B_VATT, B_QATT, B_QNET, B_VNET, B_C1, B_C2, B_LATT, B_WL) = range(10)
B_ROWS = 16


def _vqa_kernel(q_ref, v_ref, w_ref, b_ref, logits_ref, joint_ref):
    f32, bf16 = jnp.float32, jnp.bfloat16
    bias = b_ref[...]                                                # [16, 128] f32

    # -------- embedding + GRU input projection: one-hot gather of gi table ---
    # tok ids are time-major (row t*B + b = q[b, t]); ids >= NTOKEN select zero rows.
    tok = q_ref[...]                                                 # [T*B, 1] int32
    iota = lax.broadcasted_iota(jnp.int32, (T * B, NTOK_PAD), 1)
    onehot = jnp.where(tok == iota, 1.0, 0.0).astype(bf16)           # [T*B, 56]
    gi_tab = w_ref[pl.ds(GI_OFF, NTOK_PAD), :]                       # [56, 128] bf16
    gi_all = (jnp.dot(onehot, gi_tab, preferred_element_type=f32)
              + bias[B_GI:B_GI + 1, :])                              # [T*B, 128]

    # -------- q_emb: single-layer GRU (nn.GRU gate order [r|z|n]) ------------
    w_hh = w_ref[pl.ds(WHH_OFF, H), :]                               # [32, 128] bf16
    b_hn = jnp.broadcast_to(bias[B_HN:B_HN + 1, :H], (B, H))         # hoisted broadcast
    h = jnp.zeros((B, H), f32)
    for t in range(T):                                               # T static -> unrolled
        gi = gi_all[t * B:(t + 1) * B, :]                            # [B, 128]
        gh = jnp.dot(h.astype(bf16), w_hh, preferred_element_type=f32)
        rz = jax.nn.sigmoid(gi[:, :2 * H] + gh[:, :2 * H])           # r and z in one sigmoid
        r, z = rz[:, :H], rz[:, H:2 * H]
        n = jnp.tanh(gi[:, 2 * H:3 * H] + r * (gh[:, 2 * H:3 * H] + b_hn))
        h = (1.0 - z) * n + z * h
    q_emb = h                                                        # [B, H]

    # -------- v_att: NewAttention, v/q projections fused into ONE matmul -----
    v = v_ref[...]                                                   # [B, K, V] f32
    v2d = v.reshape(B * K, V)
    att_in = jnp.concatenate(
        [jnp.concatenate([v2d, jnp.zeros((B * K, H), f32)], axis=1),   # rows 0..B*K-1
         jnp.concatenate([jnp.zeros((B, V), f32), q_emb], axis=1)],    # rows B*K..
        axis=0)                                                      # [B*K+B, V+H]
    w_att = w_ref[pl.ds(WATT_OFF, V + H), :]                         # [48, 128] bf16
    att_out = jnp.dot(att_in.astype(bf16), w_att, preferred_element_type=f32)
    v_proj = jnp.maximum(att_out[:B * K, :] + bias[B_VATT:B_VATT + 1, :], 0.0)
    q_proj = jnp.maximum(att_out[B * K:, :] + bias[B_QATT:B_QATT + 1, :], 0.0)
    joint_att = v_proj.reshape(B, K, LANES) * q_proj[:, None, :]     # [B, K, 128] (cols>=H are 0)
    # attention-logit projection on VPU + XLU lane reduce (no MXU push/pop)
    wl_row = bias[B_WL:B_WL + 1, :].reshape(1, 1, LANES)             # wl_att row, f32
    att_logits = jnp.sum(joint_att * wl_row, axis=-1, keepdims=True) + bias[B_LATT, 0]
    att = jax.nn.softmax(att_logits, axis=1)                         # [B, K, 1]
    v_emb = jnp.sum(att * v, axis=1)                                 # [B, V]

    # -------- q_net / v_net (FCNet = Linear + ReLU), fused into ONE matmul ---
    net_in = jnp.concatenate(
        [jnp.concatenate([q_emb, jnp.zeros((B, V), f32)], axis=1),   # rows 0..B-1
         jnp.concatenate([jnp.zeros((B, H), f32), v_emb], axis=1)],  # rows B..
        axis=0)                                                      # [2B, H+V]
    w_net = w_ref[pl.ds(WNET_OFF, H + V), :]                         # [48, 128] bf16
    net_out = jnp.dot(net_in.astype(bf16), w_net, preferred_element_type=f32)
    q_repr = jnp.maximum(net_out[:B, :] + bias[B_QNET:B_QNET + 1, :], 0.0)
    v_repr = jnp.maximum(net_out[B:, :] + bias[B_VNET:B_VNET + 1, :], 0.0)
    joint = q_repr * v_repr                                          # [B, 128], cols >= H are 0
    # TODO(synk): training-mode nn.Dropout(dropout_hid) not modeled; identity in eval mode.

    # -------- classifier: Linear -> ReLU -> Linear (true contraction lengths)
    wc1 = w_ref[pl.ds(WC1_OFF, H), :]                                # [32, 128] bf16
    wc2 = w_ref[pl.ds(WC2_OFF, 2 * H), :]                            # [64, 128] bf16
    hdd = jnp.maximum(
        jnp.dot(joint[:, :H].astype(bf16), wc1, preferred_element_type=f32)
        + bias[B_C1:B_C1 + 1, :], 0.0)
    logits = (jnp.dot(hdd[:, :2 * H].astype(bf16), wc2, preferred_element_type=f32)
              + bias[B_C2:B_C2 + 1, :])

    logits_ref[...] = logits                                         # lane-dense [B, 128]
    joint_ref[...] = joint                                           # lane-dense [B, 128]


def _vmem_spec():
    return pl.BlockSpec(memory_space=pltpu.MemorySpace.VMEM)


def base_model_forward(packed, v, q):
    """v: [B, K, V] float32, q: [B, T] int32 ids. Returns (logits [B,A], joint [B,H])."""
    q_tm = jnp.transpose(q).reshape(T * B, 1).astype(jnp.int32)      # time-major token column
    logits_p, joint_p = pl.pallas_call(
        _vqa_kernel,
        out_shape=(jax.ShapeDtypeStruct((B, LANES), jnp.float32),    # lane-dense logits
                   jax.ShapeDtypeStruct((B, LANES), jnp.float32)),   # lane-dense joint
        in_specs=[_vmem_spec(), _vmem_spec(), _vmem_spec(), _vmem_spec()],
        out_specs=(_vmem_spec(), _vmem_spec()),
    )(q_tm, v, packed['w_slab'], packed['b_slab'])
    return logits_p[:, :A], joint_p[:, :H]


# ---------------------------------------------------------------------------
# Parameter construction / packing (done once, outside the jitted forward).
# ---------------------------------------------------------------------------
def init_params(key):
    ks = jax.random.split(key, 20)
    s = 0.1

    def w(k, shape):
        return s * jax.random.normal(k, shape, jnp.float32)

    return {
        'emb_table': w(ks[0], (NTOKEN, E)),
        # GRU (weights stored [in, out]; gates concatenated [r | z | n])
        'w_ih': w(ks[1], (E, 3 * H)),
        'w_hh': w(ks[2], (H, 3 * H)),
        'b_ih': w(ks[3], (1, 3 * H)),
        'b_hh': w(ks[4], (1, 3 * H)),
        # attention
        'wv_att': w(ks[5], (V, H)),
        'bv_att': w(ks[6], (1, H)),
        'wq_att': w(ks[7], (H, H)),
        'bq_att': w(ks[8], (1, H)),
        'wl_att': w(ks[9], (1, H)),
        'bl_att': w(ks[10], (1, 1)),
        # q_net / v_net
        'wq_net': w(ks[11], (H, H)),
        'bq_net': w(ks[12], (1, H)),
        'wv_net': w(ks[13], (V, H)),
        'bv_net': w(ks[14], (1, H)),
        # classifier
        'wc1': w(ks[15], (H, 2 * H)),
        'bc1': w(ks[16], (1, 2 * H)),
        'wc2': w(ks[17], (2 * H, A)),
        'bc2': w(ks[18], (1, A)),
    }


def pack_params(p):
    """Pack all weights into one zero-padded bf16 slab and all biases into an f32 slab."""
    def place(slab, off, mat):
        r, c = mat.shape
        return slab.at[off:off + r, :c].set(mat.astype(slab.dtype))

    w = jnp.zeros((W_ROWS, LANES), jnp.bfloat16)
    gi_table = p['emb_table'] @ p['w_ih']                    # precomputed in f32, stored bf16
    w = place(w, GI_OFF, gi_table)                           # [NTOKEN, 3H]
    w = place(w, WHH_OFF, p['w_hh'])                         # [H, 3H]
    w = place(w, WATT_OFF, jnp.concatenate([p['wv_att'], p['wq_att']], axis=0))  # [V+H, H]
    w = place(w, WNET_OFF, jnp.concatenate([p['wq_net'], p['wv_net']], axis=0))  # [H+V, H]
    w = place(w, WC1_OFF, p['wc1'])                          # [H, 2H]
    w = place(w, WC2_OFF, p['wc2'])                          # [2H, A]

    b = jnp.zeros((B_ROWS, LANES), jnp.float32)
    b_ih = p['b_ih'][0]
    b_hh = p['b_hh'][0]
    # r/z biases add linearly before the sigmoid -> pre-sum (n gate must NOT be pre-summed).
    bias_gi = b_ih.at[:2 * H].add(b_hh[:2 * H])
    b = b.at[B_GI, :3 * H].set(bias_gi)
    b = b.at[B_HN, :H].set(b_hh[2 * H:])                     # b_hn, applied inside r * (h_n + b_hn)
    b = b.at[B_VATT, :H].set(p['bv_att'][0])
    b = b.at[B_QATT, :H].set(p['bq_att'][0])
    b = b.at[B_QNET, :H].set(p['bq_net'][0])
    b = b.at[B_VNET, :H].set(p['bv_net'][0])
    b = b.at[B_C1, :2 * H].set(p['bc1'][0])
    b = b.at[B_C2, :A].set(p['bc2'][0])
    b = b.at[B_LATT, 0].set(p['bl_att'][0, 0])
    b = b.at[B_WL, :H].set(p['wl_att'][0])                   # wl_att row (VPU+XLU logit reduce)
    return {'w_slab': w, 'b_slab': b}


# ---------------------------------------------------------------------------
# Pure-JAX reference (same math, unpacked f32 weights) for a correctness check.
# ---------------------------------------------------------------------------
def _reference_forward(p, v, q):
    wseq = jnp.take(p['emb_table'], q, axis=0)               # [B, T, E]
    h = jnp.zeros((B, H), jnp.float32)
    for t in range(T):
        x = wseq[:, t, :]
        gi = x @ p['w_ih'] + p['b_ih']
        gh = h @ p['w_hh'] + p['b_hh']
        r = jax.nn.sigmoid(gi[:, :H] + gh[:, :H])
        z = jax.nn.sigmoid(gi[:, H:2 * H] + gh[:, H:2 * H])
        n = jnp.tanh(gi[:, 2 * H:] + r * gh[:, 2 * H:])
        h = (1.0 - z) * n + z * h
    q_emb = h
    v_proj = jax.nn.relu(jnp.einsum('bkv,vh->bkh', v, p['wv_att']) + p['bv_att'])
    q_proj = jax.nn.relu(q_emb @ p['wq_att'] + p['bq_att'])
    jnt = v_proj * q_proj[:, None, :]
    att_logit = jnp.sum(jnt * p['wl_att'][0][None, None, :], -1, keepdims=True) + p['bl_att'][0, 0]
    att = jax.nn.softmax(att_logit, axis=1)
    v_emb = jnp.sum(att * v, axis=1)
    q_repr = jax.nn.relu(q_emb @ p['wq_net'] + p['bq_net'])
    v_repr = jax.nn.relu(v_emb @ p['wv_net'] + p['bv_net'])
    joint = q_repr * v_repr
    hdd = jax.nn.relu(joint @ p['wc1'] + p['bc1'])
    logits = hdd @ p['wc2'] + p['bc2']
    return logits, joint


if __name__ == "__main__":
    key = jax.random.PRNGKey(0)
    k_param, k_v, k_q = jax.random.split(key, 3)

    params = init_params(k_param)
    packed = pack_params(params)                                   # one-time packing
    v = jax.random.normal(k_v, (B, K, V), jnp.float32)             # [batch, num_objs, obj_dim]
    q = jax.random.randint(k_q, (B, T), 0, NTOKEN, jnp.int32)      # [batch, seq_length]

    fwd = jax.jit(base_model_forward)
    logits, joint = fwd(packed, v, q)
    jax.block_until_ready((logits, joint))

    assert logits.shape == (B, A) and joint.shape == (B, H)
    ref_logits, ref_joint = _reference_forward(params, v, q)
    assert jnp.allclose(logits, ref_logits, atol=1e-2, rtol=1e-2), "logits mismatch vs reference"
    assert jnp.allclose(joint, ref_joint, atol=1e-2, rtol=1e-2), "joint mismatch vs reference"
    print("KERNEL_OK")
</pallas_src>

<mosaic_0001>
module attributes {stable_mosaic.version = 11 : i64} {
  func.func @_vqa_kernel(%arg0: memref<16x1xi32, #tpu.memory_space<vmem>>, %arg1: memref<2x4x16xf32, #tpu.memory_space<vmem>>, %arg2: memref<288x128xbf16, #tpu.memory_space<vmem>>, %arg3: memref<16x128xf32, #tpu.memory_space<vmem>>, %arg4: memref<2x128xf32, #tpu.memory_space<vmem>>, %arg5: memref<2x128xf32, #tpu.memory_space<vmem>>) attributes {dimension_semantics = [], scalar_prefetch = 0 : i64, scratch_operands = 0 : i64, tpu.core_type = #tpu.core_type<tc>} {
    %c0 = arith.constant 0 : index
    %c0_0 = arith.constant 0 : index
    %0 = vector.load %arg3[%c0, %c0_0] : memref<16x128xf32, #tpu.memory_space<vmem>>, vector<16x128xf32>
    %c0_1 = arith.constant 0 : index
    %c0_2 = arith.constant 0 : index
    %1 = vector.load %arg0[%c0_1, %c0_2] : memref<16x1xi32, #tpu.memory_space<vmem>>, vector<16x1xi32>
    %2 = tpu.iota {dimensions = array<i32: 1>} : vector<16x56xi32>
    %3 = vector.broadcast %1 : vector<16x1xi32> to vector<16x56xi32>
    %4 = arith.cmpi eq, %3, %2 : vector<16x56xi32>
    %cst = arith.constant 1.000000e+00 : f32
    %cst_3 = arith.constant 0.000000e+00 : f32
    %5 = vector.broadcast %cst : f32 to vector<16x56xf32>
    %6 = vector.broadcast %cst_3 : f32 to vector<16x56xf32>
    %7 = arith.select %4, %5, %6 : vector<16x56xi1>, vector<16x56xf32>
    %8 = arith.truncf %7 : vector<16x56xf32> to vector<16x56xbf16>
    %c0_4 = arith.constant 0 : index
    %c0_5 = arith.constant 0 : index
    %9 = vector.load %arg2[%c0_4, %c0_5] : memref<288x128xbf16, #tpu.memory_space<vmem>>, vector<56x128xbf16>
    %cst_6 = arith.constant dense<0.000000e+00> : vector<16x128xf32>
    %10 = tpu.matmul %8, %9, %cst_6 {dimension_numbers = #tpu.dot_dimension_numbers<[1], [0], [0], [1], [0, 0, 1, 1], [], []>} : vector<16x56xbf16>, vector<56x128xbf16>, vector<16x128xf32> -> vector<16x128xf32>
    %11 = vector.extract_strided_slice %0 {offsets = [0, 0], sizes = [1, 128], strides = [1, 1]} : vector<16x128xf32> to vector<1x128xf32>
    %12 = vector.broadcast %11 : vector<1x128xf32> to vector<16x128xf32>
    %13 = arith.addf %10, %12 : vector<16x128xf32>
    %c64 = arith.constant 64 : index
    %c0_7 = arith.constant 0 : index
    %14 = vector.load %arg2[%c64, %c0_7] : memref<288x128xbf16, #tpu.memory_space<vmem>>, vector<32x128xbf16>
    %15 = vector.extract_strided_slice %0 {offsets = [1, 0], sizes = [1, 32], strides = [1, 1]} : vector<16x128xf32> to vector<1x32xf32>
    %16 = vector.shape_cast %15 : vector<1x32xf32> to vector<1x32xf32>
    %17 = vector.broadcast %16 : vector<1x32xf32> to vector<2x32xf32>
    %cst_8 = arith.constant 0.000000e+00 : f32
    %18 = vector.broadcast %cst_8 : f32 to vector<2x32xf32>
    %19 = vector.extract_strided_slice %13 {offsets = [0, 0], sizes = [2, 128], strides = [1, 1]} : vector<16x128xf32> to vector<2x128xf32>
    %20 = arith.truncf %18 : vector<2x32xf32> to vector<2x32xbf16>
    %cst_9 = arith.constant dense<0.000000e+00> : vector<2x128xf32>
    %21 = tpu.matmul %20, %14, %cst_9 {dimension_numbers = #tpu.dot_dimension_numbers<[1], [0], [0], [1], [0, 0, 1, 1], [], []>} : vector<2x32xbf16>, vector<32x128xbf16>, vector<2x128xf32> -> vector<2x128xf32>
    %22 = vector.extract_strided_slice %19 {offsets = [0, 0], sizes = [2, 64], strides = [1, 1]} : vector<2x128xf32> to vector<2x64xf32>
    %23 = vector.extract_strided_slice %21 {offsets = [0, 0], sizes = [2, 64], strides = [1, 1]} : vector<2x128xf32> to vector<2x64xf32>
    %24 = arith.addf %22, %23 : vector<2x64xf32>
    %25 = arith.negf %24 : vector<2x64xf32>
    %26 = math.exp %25 : vector<2x64xf32>
    %cst_10 = arith.constant 1.000000e+00 : f32
    %27 = vector.broadcast %cst_10 : f32 to vector<2x64xf32>
    %28 = arith.addf %27, %26 : vector<2x64xf32>
    %29 = arith.divf %27, %28 : vector<2x64xf32>
    %30 = vector.extract_strided_slice %29 {offsets = [0, 0], sizes = [2, 32], strides = [1, 1]} : vector<2x64xf32> to vector<2x32xf32>
    %31 = vector.extract_strided_slice %29 {offsets = [0, 32], sizes = [2, 32], strides = [1, 1]} : vector<2x64xf32> to vector<2x32xf32>
    %32 = vector.extract_strided_slice %19 {offsets = [0, 64], sizes = [2, 32], strides = [1, 1]} : vector<2x128xf32> to vector<2x32xf32>
    %33 = vector.extract_strided_slice %21 {offsets = [0, 64], sizes = [2, 32], strides = [1, 1]} : vector<2x128xf32> to vector<2x32xf32>
    %34 = arith.addf %33, %17 : vector<2x32xf32>
    %35 = arith.mulf %30, %34 : vector<2x32xf32>
    %36 = arith.addf %32, %35 : vector<2x32xf32>
    %37 = math.tanh %36 : vector<2x32xf32>
    %cst_11 = arith.constant 1.000000e+00 : f32
    %38 = vector.broadcast %cst_11 : f32 to vector<2x32xf32>
    %39 = arith.subf %38, %31 : vector<2x32xf32>
    %40 = arith.mulf %39, %37 : vector<2x32xf32>
    %41 = arith.mulf %31, %18 : vector<2x32xf32>
    %42 = arith.addf %40, %41 : vector<2x32xf32>
    %43 = vector.extract_strided_slice %13 {offsets = [2, 0], sizes = [2, 128], strides = [1, 1]} : vector<16x128xf32> to vector<2x128xf32>
    %44 = arith.truncf %42 : vector<2x32xf32> to vector<2x32xbf16>
    %cst_12 = arith.constant dense<0.000000e+00> : vector<2x128xf32>
    %45 = tpu.matmul %44, %14, %cst_12 {dimension_numbers = #tpu.dot_dimension_numbers<[1], [0], [0], [1], [0, 0, 1, 1], [], []>} : vector<2x32xbf16>, vector<32x128xbf16>, vector<2x128xf32> -> vector<2x128xf32>
    %46 = vector.extract_strided_slice %43 {offsets = [0, 0], sizes = [2, 64], strides = [1, 1]} : vector<2x128xf32> to vector<2x64xf32>
    %47 = vector.extract_strided_slice %45 {offsets = [0, 0], sizes = [2, 64], strides = [1, 1]} : vector<2x128xf32> to vector<2x64xf32>
    %48 = arith.addf %46, %47 : vector<2x64xf32>
    %49 = arith.negf %48 : vector<2x64xf32>
    %50 = math.exp %49 : vector<2x64xf32>
    %cst_13 = arith.constant 1.000000e+00 : f32
    %51 = vector.broadcast %cst_13 : f32 to vector<2x64xf32>
    %52 = arith.addf %51, %50 : vector<2x64xf32>
    %53 = arith.divf %51, %52 : vector<2x64xf32>
    %54 = vector.extract_strided_slice %53 {offsets = [0, 0], sizes = [2, 32], strides = [1, 1]} : vector<2x64xf32> to vector<2x32xf32>
    %55 = vector.extract_strided_slice %53 {offsets = [0, 32], sizes = [2, 32], strides = [1, 1]} : vector<2x64xf32> to vector<2x32xf32>
    %56 = vector.extract_strided_slice %43 {offsets = [0, 64], sizes = [2, 32], strides = [1, 1]} : vector<2x128xf32> to vector<2x32xf32>
    %57 = vector.extract_strided_slice %45 {offsets = [0, 64], sizes = [2, 32], strides = [1, 1]} : vector<2x128xf32> to vector<2x32xf32>
    %58 = arith.addf %57, %17 : vector<2x32xf32>
    %59 = arith.mulf %54, %58 : vector<2x32xf32>
    %60 = arith.addf %56, %59 : vector<2x32xf32>
    %61 = math.tanh %60 : vector<2x32xf32>
    %cst_14 = arith.constant 1.000000e+00 : f32
    %62 = vector.broadcast %cst_14 : f32 to vector<2x32xf32>
    %63 = arith.subf %62, %55 : vector<2x32xf32>
    %64 = arith.mulf %63, %61 : vector<2x32xf32>
    %65 = arith.mulf %55, %42 : vector<2x32xf32>
    %66 = arith.addf %64, %65 : vector<2x32xf32>
    %67 = vector.extract_strided_slice %13 {offsets = [4, 0], sizes = [2, 128], strides = [1, 1]} : vector<16x128xf32> to vector<2x128xf32>
    %68 = arith.truncf %66 : vector<2x32xf32> to vector<2x32xbf16>
    %cst_15 = arith.constant dense<0.000000e+00> : vector<2x128xf32>
    %69 = tpu.matmul %68, %14, %cst_15 {dimension_numbers = #tpu.dot_dimension_numbers<[1], [0], [0], [1], [0, 0, 1, 1], [], []>} : vector<2x32xbf16>, vector<32x128xbf16>, vector<2x128xf32> -> vector<2x128xf32>
    %70 = vector.extract_strided_slice %67 {offsets = [0, 0], sizes = [2, 64], strides = [1, 1]} : vector<2x128xf32> to vector<2x64xf32>
    %71 = vector.extract_strided_slice %69 {offsets = [0, 0], sizes = [2, 64], strides = [1, 1]} : vector<2x128xf32> to vector<2x64xf32>
    %72 = arith.addf %70, %71 : vector<2x64xf32>
    %73 = arith.negf %72 : vector<2x64xf32>
    %74 = math.exp %73 : vector<2x64xf32>
    %cst_16 = arith.constant 1.000000e+00 : f32
    %75 = vector.broadcast %cst_16 : f32 to vector<2x64xf32>
    %76 = arith.addf %75, %74 : vector<2x64xf32>
    %77 = arith.divf %75, %76 : vector<2x64xf32>
    %78 = vector.extract_strided_slice %77 {offsets = [0, 0], sizes = [2, 32], strides = [1, 1]} : vector<2x64xf32> to vector<2x32xf32>
    %79 = vector.extract_strided_slice %77 {offsets = [0, 32], sizes = [2, 32], strides = [1, 1]} : vector<2x64xf32> to vector<2x32xf32>
    %80 = vector.extract_strided_slice %67 {offsets = [0, 64], sizes = [2, 32], strides = [1, 1]} : vector<2x128xf32> to vector<2x32xf32>
    %81 = vector.extract_strided_slice %69 {offsets = [0, 64], sizes = [2, 32], strides = [1, 1]} : vector<2x128xf32> to vector<2x32xf32>
    %82 = arith.addf %81, %17 : vector<2x32xf32>
    %83 = arith.mulf %78, %82 : vector<2x32xf32>
    %84 = arith.addf %80, %83 : vector<2x32xf32>
    %85 = math.tanh %84 : vector<2x32xf32>
    %cst_17 = arith.constant 1.000000e+00 : f32
    %86 = vector.broadcast %cst_17 : f32 to vector<2x32xf32>
    %87 = arith.subf %86, %79 : vector<2x32xf32>
    %88 = arith.mulf %87, %85 : vector<2x32xf32>
    %89 = arith.mulf %79, %66 : vector<2x32xf32>
    %90 = arith.addf %88, %89 : vector<2x32xf32>
    %91 = vector.extract_strided_slice %13 {offsets = [6, 0], sizes = [2, 128], strides = [1, 1]} : vector<16x128xf32> to vector<2x128xf32>
    %92 = arith.truncf %90 : vector<2x32xf32> to vector<2x32xbf16>
    %cst_18 = arith.constant dense<0.000000e+00> : vector<2x128xf32>
    %93 = tpu.matmul %92, %14, %cst_18 {dimension_numbers = #tpu.dot_dimension_numbers<[1], [0], [0], [1], [0, 0, 1, 1], [], []>} : vector<2x32xbf16>, vector<32x128xbf16>, vector<2x128xf32> -> vector<2x128xf32>
    %94 = vector.extract_strided_slice %91 {offsets = [0, 0], sizes = [2, 64], strides = [1, 1]} : vector<2x128xf32> to vector<2x64xf32>
    %95 = vector.extract_strided_slice %93 {offsets = [0, 0], sizes = [2, 64], strides = [1, 1]} : vector<2x128xf32> to vector<2x64xf32>
    %96 = arith.addf %94, %95 : vector<2x64xf32>
    %97 = arith.negf %96 : vector<2x64xf32>
    %98 = math.exp %97 : vector<2x64xf32>
    %cst_19 = arith.constant 1.000000e+00 : f32
    %99 = vector.broadcast %cst_19 : f32 to vector<2x64xf32>
    %100 = arith.addf %99, %98 : vector<2x64xf32>
    %101 = arith.divf %99, %100 : vector<2x64xf32>
    %102 = vector.extract_strided_slice %101 {offsets = [0, 0], sizes = [2, 32], strides = [1, 1]} : vector<2x64xf32> to vector<2x32xf32>
    %103 = vector.extract_strided_slice %101 {offsets = [0, 32], sizes = [2, 32], strides = [1, 1]} : vector<2x64xf32> to vector<2x32xf32>
    %104 = vector.extract_strided_slice %91 {offsets = [0, 64], sizes = [2, 32], strides = [1, 1]} : vector<2x128xf32> to vector<2x32xf32>
    %105 = vector.extract_strided_slice %93 {offsets = [0, 64], sizes = [2, 32], strides = [1, 1]} : vector<2x128xf32> to vector<2x32xf32>
    %106 = arith.addf %105, %17 : vector<2x32xf32>
    %107 = arith.mulf %102, %106 : vector<2x32xf32>
    %108 = arith.addf %104, %107 : vector<2x32xf32>
    %109 = math.tanh %108 : vector<2x32xf32>
    %cst_20 = arith.constant 1.000000e+00 : f32
    %110 = vector.broadcast %cst_20 : f32 to vector<2x32xf32>
    %111 = arith.subf %110, %103 : vector<2x32xf32>
    %112 = arith.mulf %111, %109 : vector<2x32xf32>
    %113 = arith.mulf %103, %90 : vector<2x32xf32>
    %114 = arith.addf %112, %113 : vector<2x32xf32>
    %115 = vector.extract_strided_slice %13 {offsets = [8, 0], sizes = [2, 128], strides = [1, 1]} : vector<16x128xf32> to vector<2x128xf32>
    %116 = arith.truncf %114 : vector<2x32xf32> to vector<2x32xbf16>
    %cst_21 = arith.constant dense<0.000000e+00> : vector<2x128xf32>
    %117 = tpu.matmul %116, %14, %cst_21 {dimension_numbers = #tpu.dot_dimension_numbers<[1], [0], [0], [1], [0, 0, 1, 1], [], []>} : vector<2x32xbf16>, vector<32x128xbf16>, vector<2x128xf32> -> vector<2x128xf32>
    %118 = vector.extract_strided_slice %115 {offsets = [0, 0], sizes = [2, 64], strides = [1, 1]} : vector<2x128xf32> to vector<2x64xf32>
    %119 = vector.extract_strided_slice %117 {offsets = [0, 0], sizes = [2, 64], strides = [1, 1]} : vector<2x128xf32> to vector<2x64xf32>
    %120 = arith.addf %118, %119 : vector<2x64xf32>
    %121 = arith.negf %120 : vector<2x64xf32>
    %122 = math.exp %121 : vector<2x64xf32>
    %cst_22 = arith.constant 1.000000e+00 : f32
    %123 = vector.broadcast %cst_22 : f32 to vector<2x64xf32>
    %124 = arith.addf %123, %122 : vector<2x64xf32>
    %125 = arith.divf %123, %124 : vector<2x64xf32>
    %126 = vector.extract_strided_slice %125 {offsets = [0, 0], sizes = [2, 32], strides = [1, 1]} : vector<2x64xf32> to vector<2x32xf32>
    %127 = vector.extract_strided_slice %125 {offsets = [0, 32], sizes = [2, 32], strides = [1, 1]} : vector<2x64xf32> to vector<2x32xf32>
    %128 = vector.extract_strided_slice %115 {offsets = [0, 64], sizes = [2, 32], strides = [1, 1]} : vector<2x128xf32> to vector<2x32xf32>
    %129 = vector.extract_strided_slice %117 {offsets = [0, 64], sizes = [2, 32], strides = [1, 1]} : vector<2x128xf32> to vector<2x32xf32>
    %130 = arith.addf %129, %17 : vector<2x32xf32>
    %131 = arith.mulf %126, %130 : vector<2x32xf32>
    %132 = arith.addf %128, %131 : vector<2x32xf32>
    %133 = math.tanh %132 : vector<2x32xf32>
    %cst_23 = arith.constant 1.000000e+00 : f32
    %134 = vector.broadcast %cst_23 : f32 to vector<2x32xf32>
    %135 = arith.subf %134, %127 : vector<2x32xf32>
    %136 = arith.mulf %135, %133 : vector<2x32xf32>
    %137 = arith.mulf %127, %114 : vector<2x32xf32>
    %138 = arith.addf %136, %137 : vector<2x32xf32>
    %139 = vector.extract_strided_slice %13 {offsets = [10, 0], sizes = [2, 128], strides = [1, 1]} : vector<16x128xf32> to vector<2x128xf32>
    %140 = arith.truncf %138 : vector<2x32xf32> to vector<2x32xbf16>
    %cst_24 = arith.constant dense<0.000000e+00> : vector<2x128xf32>
    %141 = tpu.matmul %140, %14, %cst_24 {dimension_numbers = #tpu.dot_dimension_numbers<[1], [0], [0], [1], [0, 0, 1, 1], [], []>} : vector<2x32xbf16>, vector<32x128xbf16>, vector<2x128xf32> -> vector<2x128xf32>
    %142 = vector.extract_strided_slice %139 {offsets = [0, 0], sizes = [2, 64], strides = [1, 1]} : vector<2x128xf32> to vector<2x64xf32>
    %143 = vector.extract_strided_slice %141 {offsets = [0, 0], sizes = [2, 64], strides = [1, 1]} : vector<2x128xf32> to vector<2x64xf32>
    %144 = arith.addf %142, %143 : vector<2x64xf32>
    %145 = arith.negf %144 : vector<2x64xf32>
    %146 = math.exp %145 : vector<2x64xf32>
    %cst_25 = arith.constant 1.000000e+00 : f32
    %147 = vector.broadcast %cst_25 : f32 to vector<2x64xf32>
    %148 = arith.addf %147, %146 : vector<2x64xf32>
    %149 = arith.divf %147, %148 : vector<2x64xf32>
    %150 = vector.extract_strided_slice %149 {offsets = [0, 0], sizes = [2, 32], strides = [1, 1]} : vector<2x64xf32> to vector<2x32xf32>
    %151 = vector.extract_strided_slice %149 {offsets = [0, 32], sizes = [2, 32], strides = [1, 1]} : vector<2x64xf32> to vector<2x32xf32>
    %152 = vector.extract_strided_slice %139 {offsets = [0, 64], sizes = [2, 32], strides = [1, 1]} : vector<2x128xf32> to vector<2x32xf32>
    %153 = vector.extract_strided_slice %141 {offsets = [0, 64], sizes = [2, 32], strides = [1, 1]} : vector<2x128xf32> to vector<2x32xf32>
    %154 = arith.addf %153, %17 : vector<2x32xf32>
    %155 = arith.mulf %150, %154 : vector<2x32xf32>
    %156 = arith.addf %152, %155 : vector<2x32xf32>
    %157 = math.tanh %156 : vector<2x32xf32>
    %cst_26 = arith.constant 1.000000e+00 : f32
    %158 = vector.broadcast %cst_26 : f32 to vector<2x32xf32>
    %159 = arith.subf %158, %151 : vector<2x32xf32>
    %160 = arith.mulf %159, %157 : vector<2x32xf32>
    %161 = arith.mulf %151, %138 : vector<2x32xf32>
    %162 = arith.addf %160, %161 : vector<2x32xf32>
    %163 = vector.extract_strided_slice %13 {offsets = [12, 0], sizes = [2, 128], strides = [1, 1]} : vector<16x128xf32> to vector<2x128xf32>
    %164 = arith.truncf %162 : vector<2x32xf32> to vector<2x32xbf16>
    %cst_27 = arith.constant dense<0.000000e+00> : vector<2x128xf32>
    %165 = tpu.matmul %164, %14, %cst_27 {dimension_numbers = #tpu.dot_dimension_numbers<[1], [0], [0], [1], [0, 0, 1, 1], [], []>} : vector<2x32xbf16>, vector<32x128xbf16>, vector<2x128xf32> -> vector<2x128xf32>
    %166 = vector.extract_strided_slice %163 {offsets = [0, 0], sizes = [2, 64], strides = [1, 1]} : vector<2x128xf32> to vector<2x64xf32>
    %167 = vector.extract_strided_slice %165 {offsets = [0, 0], sizes = [2, 64], strides = [1, 1]} : vector<2x128xf32> to vector<2x64xf32>
    %168 = arith.addf %166, %167 : vector<2x64xf32>
    %169 = arith.negf %168 : vector<2x64xf32>
    %170 = math.exp %169 : vector<2x64xf32>
    %cst_28 = arith.constant 1.000000e+00 : f32
    %171 = vector.broadcast %cst_28 : f32 to vector<2x64xf32>
    %172 = arith.addf %171, %170 : vector<2x64xf32>
    %173 = arith.divf %171, %172 : vector<2x64xf32>
    %174 = vector.extract_strided_slice %173 {offsets = [0, 0], sizes = [2, 32], strides = [1, 1]} : vector<2x64xf32> to vector<2x32xf32>
    %175 = vector.extract_strided_slice %173 {offsets = [0, 32], sizes = [2, 32], strides = [1, 1]} : vector<2x64xf32> to vector<2x32xf32>
    %176 = vector.extract_strided_slice %163 {offsets = [0, 64], sizes = [2, 32], strides = [1, 1]} : vector<2x128xf32> to vector<2x32xf32>
    %177 = vector.extract_strided_slice %165 {offsets = [0, 64], sizes = [2, 32], strides = [1, 1]} : vector<2x128xf32> to vector<2x32xf32>
    %178 = arith.addf %177, %17 : vector<2x32xf32>
    %179 = arith.mulf %174, %178 : vector<2x32xf32>
    %180 = arith.addf %176, %179 : vector<2x32xf32>
    %181 = math.tanh %180 : vector<2x32xf32>
    %cst_29 = arith.constant 1.000000e+00 : f32
    %182 = vector.broadcast %cst_29 : f32 to vector<2x32xf32>
    %183 = arith.subf %182, %175 : vector<2x32xf32>
    %184 = arith.mulf %183, %181 : vector<2x32xf32>
    %185 = arith.mulf %175, %162 : vector<2x32xf32>
    %186 = arith.addf %184, %185 : vector<2x32xf32>
    %187 = vector.extract_strided_slice %13 {offsets = [14, 0], sizes = [2, 128], strides = [1, 1]} : vector<16x128xf32> to vector<2x128xf32>
    %188 = arith.truncf %186 : vector<2x32xf32> to vector<2x32xbf16>
    %cst_30 = arith.constant dense<0.000000e+00> : vector<2x128xf32>
    %189 = tpu.matmul %188, %14, %cst_30 {dimension_numbers = #tpu.dot_dimension_numbers<[1], [0], [0], [1], [0, 0, 1, 1], [], []>} : vector<2x32xbf16>, vector<32x128xbf16>, vector<2x128xf32> -> vector<2x128xf32>
    %190 = vector.extract_strided_slice %187 {offsets = [0, 0], sizes = [2, 64], strides = [1, 1]} : vector<2x128xf32> to vector<2x64xf32>
    %191 = vector.extract_strided_slice %189 {offsets = [0, 0], sizes = [2, 64], strides = [1, 1]} : vector<2x128xf32> to vector<2x64xf32>
    %192 = arith.addf %190, %191 : vector<2x64xf32>
    %193 = arith.negf %192 : vector<2x64xf32>
    %194 = math.exp %193 : vector<2x64xf32>
    %cst_31 = arith.constant 1.000000e+00 : f32
    %195 = vector.broadcast %cst_31 : f32 to vector<2x64xf32>
    %196 = arith.addf %195, %194 : vector<2x64xf32>
    %197 = arith.divf %195, %196 : vector<2x64xf32>
    %198 = vector.extract_strided_slice %197 {offsets = [0, 0], sizes = [2, 32], strides = [1, 1]} : vector<2x64xf32> to vector<2x32xf32>
    %199 = vector.extract_strided_slice %197 {offsets = [0, 32], sizes = [2, 32], strides = [1, 1]} : vector<2x64xf32> to vector<2x32xf32>
    %200 = vector.extract_strided_slice %187 {offsets = [0, 64], sizes = [2, 32], strides = [1, 1]} : vector<2x128xf32> to vector<2x32xf32>
    %201 = vector.extract_strided_slice %189 {offsets = [0, 64], sizes = [2, 32], strides = [1, 1]} : vector<2x128xf32> to vector<2x32xf32>
    %202 = arith.addf %201, %17 : vector<2x32xf32>
    %203 = arith.mulf %198, %202 : vector<2x32xf32>
    %204 = arith.addf %200, %203 : vector<2x32xf32>
    %205 = math.tanh %204 : vector<2x32xf32>
    %cst_32 = arith.constant 1.000000e+00 : f32
    %206 = vector.broadcast %cst_32 : f32 to vector<2x32xf32>
    %207 = arith.subf %206, %199 : vector<2x32xf32>
    %208 = arith.mulf %207, %205 : vector<2x32xf32>
    %209 = arith.mulf %199, %186 : vector<2x32xf32>
    %210 = arith.addf %208, %209 : vector<2x32xf32>
    %c0_33 = arith.constant 0 : index
    %c0_34 = arith.constant 0 : index
    %c0_35 = arith.constant 0 : index
    %211 = vector.load %arg1[%c0_33, %c0_34, %c0_35] : memref<2x4x16xf32, #tpu.memory_space<vmem>>, vector<2x4x16xf32>
    %212 = vector.shape_cast %211 : vector<2x4x16xf32> to vector<8x16xf32>
    %cst_36 = arith.constant 0.000000e+00 : f32
    %213 = vector.broadcast %cst_36 : f32 to vector<8x32xf32>
    %214 = tpu.concatenate %212, %213 in 1 : vector<8x16xf32>, vector<8x32xf32> -> vector<8x48xf32>
    %cst_37 = arith.constant 0.000000e+00 : f32
    %215 = vector.broadcast %cst_37 : f32 to vector<2x16xf32>
    %216 = tpu.concatenate %215, %210 in 1 : vector<2x16xf32>, vector<2x32xf32> -> vector<2x48xf32>
    %217 = tpu.concatenate %214, %216 in 0 : vector<8x48xf32>, vector<2x48xf32> -> vector<10x48xf32>
    %c96 = arith.constant 96 : index
    %c0_38 = arith.constant 0 : index
    %218 = vector.load %arg2[%c96, %c0_38] : memref<288x128xbf16, #tpu.memory_space<vmem>>, vector<48x128xbf16>
    %219 = arith.truncf %217 : vector<10x48xf32> to vector<10x48xbf16>
    %cst_39 = arith.constant dense<0.000000e+00> : vector<10x128xf32>
    %220 = tpu.matmul %219, %218, %cst_39 {dimension_numbers = #tpu.dot_dimension_numbers<[1], [0], [0], [1], [0, 0, 1, 1], [], []>} : vector<10x48xbf16>, vector<48x128xbf16>, vector<10x128xf32> -> vector<10x128xf32>
    %221 = vector.extract_strided_slice %220 {offsets = [0, 0], sizes = [8, 128], strides = [1, 1]} : vector<10x128xf32> to vector<8x128xf32>
    %222 = vector.extract_strided_slice %0 {offsets = [2, 0], sizes = [1, 128], strides = [1, 1]} : vector<16x128xf32> to vector<1x128xf32>
    %223 = vector.broadcast %222 : vector<1x128xf32> to vector<8x128xf32>
    %224 = arith.addf %221, %223 : vector<8x128xf32>
    %cst_40 = arith.constant 0.000000e+00 : f32
    %225 = vector.broadcast %cst_40 : f32 to vector<8x128xf32>
    %226 = arith.maximumf %224, %225 : vector<8x128xf32>
    %227 = vector.extract_strided_slice %220 {offsets = [8, 0], sizes = [2, 128], strides = [1, 1]} : vector<10x128xf32> to vector<2x128xf32>
    %228 = vector.extract_strided_slice %0 {offsets = [3, 0], sizes = [1, 128], strides = [1, 1]} : vector<16x128xf32> to vector<1x128xf32>
    %229 = vector.broadcast %228 : vector<1x128xf32> to vector<2x128xf32>
    %230 = arith.addf %227, %229 : vector<2x128xf32>
    %cst_41 = arith.constant 0.000000e+00 : f32
    %231 = vector.broadcast %cst_41 : f32 to vector<2x128xf32>
    %232 = arith.maximumf %230, %231 : vector<2x128xf32>
    %233 = vector.shape_cast %226 : vector<8x128xf32> to vector<2x4x128xf32>
    %234 = vector.shape_cast %232 : vector<2x128xf32> to vector<2x1x128xf32>
    %235 = vector.broadcast %234 : vector<2x1x128xf32> to vector<2x4x128xf32>
    %236 = arith.mulf %233, %235 : vector<2x4x128xf32>
    %237 = vector.extract_strided_slice %0 {offsets = [9, 0], sizes = [1, 128], strides = [1, 1]} : vector<16x128xf32> to vector<1x128xf32>
    %238 = vector.shape_cast %237 : vector<1x128xf32> to vector<1x1x128xf32>
    %239 = vector.broadcast %238 : vector<1x1x128xf32> to vector<2x4x128xf32>
    %240 = arith.mulf %236, %239 : vector<2x4x128xf32>
    %cst_42 = arith.constant dense<0.000000e+00> : vector<2x4xf32>
    %241 = vector.multi_reduction <add>, %240, %cst_42 [2] : vector<2x4x128xf32> to vector<2x4xf32>
    %242 = vector.shape_cast %241 : vector<2x4xf32> to vector<2x4x1xf32>
    %243 = vector.extract_strided_slice %0 {offsets = [8, 0], sizes = [1, 1], strides = [1, 1]} : vector<16x128xf32> to vector<1x1xf32>
    %244 = vector.extract %243[0, 0] : f32 from vector<1x1xf32>
    %245 = vector.broadcast %244 : f32 to vector<2x4x1xf32>
    %246 = arith.addf %242, %245 : vector<2x4x1xf32>
    %cst_43 = arith.constant dense<0xFF800000> : vector<2x1xf32>
    %247 = vector.multi_reduction <maximumf>, %246, %cst_43 [1] : vector<2x4x1xf32> to vector<2x1xf32>
    %cst_44 = arith.constant 0xFF800000 : f32
    %248 = vector.broadcast %cst_44 : f32 to vector<2x1xf32>
    %249 = arith.maximumf %248, %247 : vector<2x1xf32>
    %250 = vector.shape_cast %249 : vector<2x1xf32> to vector<2x1x1xf32>
    %251 = vector.broadcast %250 : vector<2x1x1xf32> to vector<2x4x1xf32>
    %252 = arith.subf %246, %251 : vector<2x4x1xf32>
    %253 = math.exp %252 : vector<2x4x1xf32>
    %cst_45 = arith.constant dense<0.000000e+00> : vector<2x1xf32>
    %254 = vector.multi_reduction <add>, %253, %cst_45 [1] : vector<2x4x1xf32> to vector<2x1xf32>
    %255 = vector.shape_cast %254 : vector<2x1xf32> to vector<2x1x1xf32>
    %256 = vector.broadcast %255 : vector<2x1x1xf32> to vector<2x4x1xf32>
    %257 = arith.divf %253, %256 : vector<2x4x1xf32>
    %258 = vector.broadcast %257 : vector<2x4x1xf32> to vector<2x4x16xf32>
    %259 = arith.mulf %258, %211 : vector<2x4x16xf32>
    %cst_46 = arith.constant dense<0.000000e+00> : vector<2x16xf32>
    %260 = vector.multi_reduction <add>, %259, %cst_46 [1] : vector<2x4x16xf32> to vector<2x16xf32>
    %cst_47 = arith.constant 0.000000e+00 : f32
    %261 = vector.broadcast %cst_47 : f32 to vector<2x16xf32>
    %262 = tpu.concatenate %210, %261 in 1 : vector<2x32xf32>, vector<2x16xf32> -> vector<2x48xf32>
    %cst_48 = arith.constant 0.000000e+00 : f32
    %263 = vector.broadcast %cst_48 : f32 to vector<2x32xf32>
    %264 = tpu.concatenate %263, %260 in 1 : vector<2x32xf32>, vector<2x16xf32> -> vector<2x48xf32>
    %265 = tpu.concatenate %262, %264 in 0 : vector<2x48xf32>, vector<2x48xf32> -> vector<4x48xf32>
    %c144 = arith.constant 144 : index
    %c0_49 = arith.constant 0 : index
    %266 = vector.load %arg2[%c144, %c0_49] : memref<288x128xbf16, #tpu.memory_space<vmem>>, vector<48x128xbf16>
    %267 = arith.truncf %265 : vector<4x48xf32> to vector<4x48xbf16>
    %cst_50 = arith.constant dense<0.000000e+00> : vector<4x128xf32>
    %268 = tpu.matmul %267, %266, %cst_50 {dimension_numbers = #tpu.dot_dimension_numbers<[1], [0], [0], [1], [0, 0, 1, 1], [], []>} : vector<4x48xbf16>, vector<48x128xbf16>, vector<4x128xf32> -> vector<4x128xf32>
    %269 = vector.extract_strided_slice %268 {offsets = [0, 0], sizes = [2, 128], strides = [1, 1]} : vector<4x128xf32> to vector<2x128xf32>
    %270 = vector.extract_strided_slice %0 {offsets = [4, 0], sizes = [1, 128], strides = [1, 1]} : vector<16x128xf32> to vector<1x128xf32>
    %271 = vector.broadcast %270 : vector<1x128xf32> to vector<2x128xf32>
    %272 = arith.addf %269, %271 : vector<2x128xf32>
    %cst_51 = arith.constant 0.000000e+00 : f32
    %273 = vector.broadcast %cst_51 : f32 to vector<2x128xf32>
    %274 = arith.maximumf %272, %273 : vector<2x128xf32>
    %275 = vector.extract_strided_slice %268 {offsets = [2, 0], sizes = [2, 128], strides = [1, 1]} : vector<4x128xf32> to vector<2x128xf32>
    %276 = vector.extract_strided_slice %0 {offsets = [5, 0], sizes = [1, 128], strides = [1, 1]} : vector<16x128xf32> to vector<1x128xf32>
    %277 = vector.broadcast %276 : vector<1x128xf32> to vector<2x128xf32>
    %278 = arith.addf %275, %277 : vector<2x128xf32>
    %cst_52 = arith.constant 0.000000e+00 : f32
    %279 = vector.broadcast %cst_52 : f32 to vector<2x128xf32>
    %280 = arith.maximumf %278, %279 : vector<2x128xf32>
    %281 = arith.mulf %274, %280 : vector<2x128xf32>
    %c192 = arith.constant 192 : index
    %c0_53 = arith.constant 0 : index
    %282 = vector.load %arg2[%c192, %c0_53] : memref<288x128xbf16, #tpu.memory_space<vmem>>, vector<32x128xbf16>
    %c224 = arith.constant 224 : index
    %c0_54 = arith.constant 0 : index
    %283 = vector.load %arg2[%c224, %c0_54] : memref<288x128xbf16, #tpu.memory_space<vmem>>, vector<64x128xbf16>
    %284 = vector.extract_strided_slice %281 {offsets = [0, 0], sizes = [2, 32], strides = [1, 1]} : vector<2x128xf32> to vector<2x32xf32>
    %285 = arith.truncf %284 : vector<2x32xf32> to vector<2x32xbf16>
    %cst_55 = arith.constant dense<0.000000e+00> : vector<2x128xf32>
    %286 = tpu.matmul %285, %282, %cst_55 {dimension_numbers = #tpu.dot_dimension_numbers<[1], [0], [0], [1], [0, 0, 1, 1], [], []>} : vector<2x32xbf16>, vector<32x128xbf16>, vector<2x128xf32> -> vector<2x128xf32>
    %287 = vector.extract_strided_slice %0 {offsets = [6, 0], sizes = [1, 128], strides = [1, 1]} : vector<16x128xf32> to vector<1x128xf32>
    %288 = vector.broadcast %287 : vector<1x128xf32> to vector<2x128xf32>
    %289 = arith.addf %286, %288 : vector<2x128xf32>
    %cst_56 = arith.constant 0.000000e+00 : f32
    %290 = vector.broadcast %cst_56 : f32 to vector<2x128xf32>
    %291 = arith.maximumf %289, %290 : vector<2x128xf32>
    %292 = vector.extract_strided_slice %291 {offsets = [0, 0], sizes = [2, 64], strides = [1, 1]} : vector<2x128xf32> to vector<2x64xf32>
    %293 = arith.truncf %292 : vector<2x64xf32> to vector<2x64xbf16>
    %cst_57 = arith.constant dense<0.000000e+00> : vector<2x128xf32>
    %294 = tpu.matmul %293, %283, %cst_57 {dimension_numbers = #tpu.dot_dimension_numbers<[1], [0], [0], [1], [0, 0, 1, 1], [], []>} : vector<2x64xbf16>, vector<64x128xbf16>, vector<2x128xf32> -> vector<2x128xf32>
    %295 = vector.extract_strided_slice %0 {offsets = [7, 0], sizes = [1, 128], strides = [1, 1]} : vector<16x128xf32> to vector<1x128xf32>
    %296 = vector.broadcast %295 : vector<1x128xf32> to vector<2x128xf32>
    %297 = arith.addf %294, %296 : vector<2x128xf32>
    %c0_58 = arith.constant 0 : index
    %c0_59 = arith.constant 0 : index
    %298 = vector.load %arg4[%c0_58, %c0_59] : memref<2x128xf32, #tpu.memory_space<vmem>>, vector<2x128xf32>
    tpu.vector_store %arg4[%c0_58, %c0_59], %297 {strides = array<i32>} : memref<2x128xf32, #tpu.memory_space<vmem>>, vector<2x128xf32>,
    %c0_60 = arith.constant 0 : index
    %c0_61 = arith.constant 0 : index
    %299 = vector.load %arg5[%c0_60, %c0_61] : memref<2x128xf32, #tpu.memory_space<vmem>>, vector<2x128xf32>
    tpu.vector_store %arg5[%c0_60, %c0_61], %281 {strides = array<i32>} : memref<2x128xf32, #tpu.memory_space<vmem>>, vector<2x128xf32>,
    return
  }
}

</mosaic_0001>

<bundles_post_ra>
// kernel: base_model_forward.1
= control target key start
LH: loop header
LB: loop body
LE: loop exit
PB: predicated region body
PF: predicated region fallthrough
CT: control target
= control target key end

     0   :  { %11 = vsyncpa [#allocation3], 0  ;;  %s1944_s0 = inlined_call_operand.vmem [shape: s32[16,1], index: 0, kind: input, shape index: {}]   ;;  %s1945_s1 = inlined_call_operand.vmem [shape: f32[2,4,16], index: 1, kind: input, shape index: {}]   ;;  %s1946_s2 = inlined_call_operand.hbm [shape: bf16[288,128], index: 2, kind: input, shape index: {}]   ;;  %s1947_s3 = inlined_call_operand.vmem [shape: f32[16,128], index: 3, kind: input, shape index: {}]   ;;  %s1948_s4 = inlined_call_operand.hbm [shape: f32[2,128], index: 4, kind: output, shape index: {0}]   ;;  %s1949_s5 = inlined_call_operand.hbm [shape: f32[2,128], index: 5, kind: output, shape index: {1}]  }
   0x1   :  { %12 = vsyncpa [#allocation4], 0 }
   0x2   :  { %13 = vsyncpa [#allocation7], 0  ;;  %s1645_s18 = smov [#allocation2]   ;;  %s1573_s22 = scalar_lea.hbm %s1946_s2, 2304 }
   0x3   :  { %s23_s19 = sshll.u32 %s1645_s18, 4  ;;  %p1574_p0 = scmp.ne.s32.totalorder %s1946_s2, %s1573_s22  ;;  %s24_s19 = int_to_ptr.vmem [resolvable:$true] %s23_s19 }
   0x4   :  { %p1577_p1 = scmp.lt.u32.totalorder %s1573_s22, %s1946_s2 }
   0x6   :  { %p1579_p2 = pnand %p1577_p1, %p1574_p0 }
   0x8   :  { %1582 = shalt.err (!%p1579_p2)
}
   0x9   :  { %s1583_s27 = scalar_lea.vmem %s24_s19, 2304  ;;  %p1588_p4 = scmp.lt.s32.totalorder %s24_s19, %s24_s19 }
   0xa   :  { %p1584_p3 = scmp.ne.s32.totalorder %s24_s19, %s1583_s27  ;;  %p1589_p5 = scmp.lt.s32.totalorder %s1583_s27, %s1583_s27 }
   0xc   :  { %p1590_p6 = por %p1589_p5, %p1588_p4 }
   0xe   :  { %p1591_p7 = pnand %p1590_p6, %p1584_p3 }
  0x10   :  { %1594 = shalt.err (!%p1591_p7)
}
  0x11   :  { %s1646_s28 = smov 64   ;;  %s1647_s29 = smov 4  }
  0x12   :  { %29 = dma.hbm_to_vmem [thread:$0]  %s1946_s2, 2304, %s24_s19, [#allocation3], %s1646_s28, %s1646_s28, %s1647_s29  }
  0x13   :  { %1639 = dma.done.wait [#allocation3], 2304  }
  0x14   :  { %1640 = vsyncadd [#allocation3], 4294964992  ;;  %v1648_v0 = vmov 0   ;;  %v1649_v1 = vmov 0.0   ;;  %vm1650_vm0 = vmmov 0   ;;  %v38_v2 = vld [vmem:[%s1944_s0] sm:$0xff]  ;;  %v40_v6 = vlaneseq }
  0x15   :  { %1496 = vset.pattern.permute.xlu0 %v1648_v0  ;;  %1378 = vmatprep.subr.bf16.mxu1 %v1649_v1  ;;  %v39_v3 = vld [vmem:[%s1944_s0 + $0x8] sm:$0xff]  ;;  %v1713_v4 = vld [vmem:[#allocation2 + $0x20] sm:$0xff]   ;;  %vm89_vm1 = vcmask 1043456   ;;  %v1502_v10 = vld [vmem:[#allocation2 + $0x18] ss:$0 sps:$4 sm:$0xff]   ;;  %vm85_vm4 = vcmask 457728  }
  0x16   :  { %1382 = vmatprep.mubr.msk.bf16.mxu1 %vm1650_vm0, %v1649_v1  ;;  %1366 = vmatprep.subr.bf16.mxu0 %v1649_v1  ;;  %v1715_v5 = vld [vmem:[#allocation2 + $0x28] sm:$0xff]   ;;  %v1499_v7 = vld [vmem:[#allocation2] sm:$0xff]   ;;  %v1719_v8 = vshrl.u32 %v40_v6, 7  ;;  %v1501_v11 = vld [vmem:[#allocation2 + $0x10] sm:$0xff]   ;;  %v91_v12 = vsel %vm89_vm1, %v1502_v10, 0  ;;  %v41_v18 = vand.u32 127, %v40_v6 }
  0x17   :  { %1374 = vmatprep.mubr.msk.bf16.mxu0 %vm1650_vm0, %v1649_v1  ;;  %43 = vperm.xlu0 %1496, %v38_v2   ;;  %v1500_v9 = vld [vmem:[#allocation2 + $0x8] sm:$0xff]   ;;  %v1728_v13 = vld [vmem:[%s1947_s3] sm:$0xff]  ;;  %s1651_s13 = smov 96   ;;  %vm154_vm5 = vcmask 261120   ;;  %s1652_s14 = smov 112   ;;  %vm803_vm6 = vcmask 130048  }
  0x18   :  { %1379 = vmatpush3.bf16.msra.mxu1 %v1713_v4  ;;  %1367 = vmatpush3.bf16.msra.mxu0 %v1499_v7  ;;  %v37_v14 = vld [vmem:[%s1947_s3 + $0x8] sm:$0xff]  ;;  %v140_v15 = vsub.s32 1, %v1719_v8  ;;  %v1760_v30 = vsub.s32 0, %v1719_v8  ;;  %vm836_vm7 = vcmask 392192   ;;  %vm987_vm8 = vcmask 125952   ;;  %s1654_s19 = smov 32  }
  0x19   :  { %1380 = vmatprep.subr.bf16.mxu1 %v1649_v1  ;;  %1368 = vmatprep.subr.bf16.mxu0 %v1649_v1  ;;  %1482 = vpush %v37_v14  ;;  %vm1008_vm9 = vcmask 1041409   ;;  %vm1020_vm10 = vcmask 1041408   ;;  %vm1208_vm11 = vcmask 523264   ;;  %s1655_s22 = smov [#allocation6]  }
  0x1a   :  { %v141_v16 = vrot.slane %v1728_v13, %v140_v15  ;;  %v1736_v17 = vrot.slane %v37_v14, %v140_v15  ;;  %v63_v31 = vrot.slane %v1728_v13, %v1760_v30  ;;  %s1270_s23 = sshll.u32 %s1655_s22, 4  ;;  %s1271_s23 = int_to_ptr.vmem [resolvable:$true] %s1270_s23 }
  0x1b   :  { %46 = vperm.xlu0 %1496, %v39_v3   ;;  %s1595_s24 = scalar_lea.vmem %s1271_s23, 32  ;;  %p1600_p9 = scmp.lt.s32.totalorder %s1271_s23, %s1271_s23 }
  0x1c   :  { %1381 = vmatpush3.bf16.msra.mxu1 %v1715_v5  ;;  %1369 = vmatpush3.bf16.msra.mxu0 %v1500_v9  ;;  %p1596_p8 = scmp.ne.s32.totalorder %s1271_s23, %s1595_s24  ;;  %p1601_p10 = scmp.lt.s32.totalorder %s1595_s24, %s1595_s24 }
  0x1d   :  { %1386 = vmatprep.subr.bf16.mxu1 %v1649_v1  ;;  %1370 = vmatprep.subr.bf16.mxu0 %v1649_v1 }
  0x1e   :  { %206 = vrot.lane.b32.xlu1 %v141_v16, %s1646_s28  ;;  %p1602_p11 = por %p1601_p10, %p1600_p9 }
  0x1f   :  { %1383 = vmatmul.mubr.bf16.vlgmr.msra.gmra.mrb[0].mxu1 %v1648_v0 }
  0x20   :  { %1387 = vmatpush3.bf16.msra.mxu1 %v1713_v4  ;;  %1390 = vmatprep.mubr.msk.bf16.mxu1 %vm1650_vm0, %v1649_v1  ;;  %p1603_p12 = pnand %p1602_p11, %p1596_p8 }
  0x21   :  { %1388 = vmatprep.subr.bf16.mxu1 %v1649_v1  ;;  %1371 = vmatpush3.bf16.msra.mxu0 %v1501_v11 }
  0x22   :  { %1372 = vmatprep.subr.bf16.mxu0 %v1649_v1 }
  0x24   :  { %1389 = vmatpush3.bf16.msra.mxu1 %v1715_v5 }
  0x25   :  { %1402 = vmatprep.subr.bf16.mxu1 %v1649_v1  ;;  %1373 = vmatpush3.bf16.msra.mxu0 %v91_v12 }
  0x26   :  { %1394 = vmatprep.subr.bf16.mxu0 %v1649_v1 }
  0x90   :  { %v1755_v24 = vpop.permute.xlu1 %206 }
  0x96   :  { %v44_v19 = vpop.permute.xlu0 %43 }
  0x97   :  { %vm48_vm2 = vcmp.eq.s32.totalorder %v44_v19, %v41_v18 }
  0x98   :  { %v50_v21 = vsel %vm48_vm2, 1.0, %v1649_v1 }
  0x9a   :  { %v47_v20 = vpop.permute.xlu0 %46 }
  0x9b   :  { %vm49_vm3 = vcmp.eq.s32.totalorder %v47_v20, %v41_v18 }
  0x9c   :  { %v51_v22 = vsel %vm49_vm3, 1.0, %v1649_v1 }
  0x9d   :  { %v52_v23 = vpack.c.bf16 %v51_v22, %v50_v21 }
  0x9f   :  { %1375 = vmatmul.mubr.msk.bf16.vlgmr.msra.gmra.mrb[0].mxu0 %vm85_vm4, %v52_v23 }
  0xa0   :  { %1395 = vmatpush3.bf16.msra.mxu0 %v1713_v4  ;;  %1398 = vmatprep.mubr.msk.bf16.mxu0 %vm1650_vm0, %v1649_v1 }
  0xa1   :  { %1396 = vmatprep.subr.bf16.mxu0 %v1649_v1 }
  0xa4   :  { %1397 = vmatpush3.bf16.msra.mxu0 %v1715_v5 }
  0xa5   :  { %1410 = vmatprep.subr.bf16.mxu0 %v1649_v1 }
  0xf2   :  { %v192_v25 = vpop.f32.mrb[0].mxu1 }
  0xf3   :  { %v1384_v26 = vpop.f32.mrb[1].mxu1  ;;  %v209_v27 = vadd.f32 %v1755_v24, %v192_v25 }
  0xf4   :  { %v195_v28 = vpop.f32.mrb[2].mxu1 }
  0xf5   :  { %v1385_v29 = vpop.f32.mrb[3].mxu1  ;;  %211 = vrot.lane.b32.xlu1 %v209_v27, %s1646_s28 }
 0x167   :  { %v212_v42 = vpop.permute.xlu1 %211 }
 0x172   :  { %v127_v32 = vpop.f32.mrb[0].mxu0 }
 0x173   :  { %v1764_v33 = vadd.f32 %v127_v32, %v63_v31  ;;  %v1376_v34 = vpop.f32.mrb[1].mxu0 }
 0x174   :  { %v130_v35 = vpop.f32.mrb[2].mxu0 }
 0x175   :  { %v1766_v36 = vadd.f32 %v130_v35, %v63_v31  ;;  %v1377_v37 = vpop.f32.mrb[3].mxu0  ;;  %v198_v38 = vadd.f32 %v192_v25, %v1764_v33 }
 0x177   :  { %v1290_v39 = vmul.f32 -1.442695, %v198_v38 }
 0x179   :  { %1516 = vpow2.f32 %v1290_v39 }
 0x183   :  { %v1517_v40 = vpop.eup %1516 }
 0x184   :  { %v202_v41 = vadd.f32 1.0, %v1517_v40 }
 0x186   :  { %1518 = vrcp.f32 %v202_v41 }
 0x190   :  { %v1519_v43 = vpop.eup %1518 }
 0x191   :  { %v214_v44 = vmul.f32 %v1519_v43, %v212_v42  ;;  %v221_v48 = vsub.f32 1.0, %v1519_v43  ;;  %v227_v50 = vmul.f32 0.0, %v1519_v43 }
 0x193   :  { %216 = vrot.lane.b32.xlu0 %v214_v44, %s1646_s28 }
 0x205   :  { %v217_v45 = vpop.permute.xlu0 %216 }
 0x206   :  { %v219_v46 = vadd.f32 %v217_v45, %v1764_v33 }
 0x208   :  { %1520 = vtanh.f32 %v219_v46 }
 0x212   :  { %v1521_v47 = vpop.eup %1520 }
 0x213   :  { %223 = vrot.lane.b32.xlu1 %v1521_v47, %s1651_s13 }
 0x285   :  { %v224_v49 = vpop.permute.xlu1 %223 }
 0x286   :  { %v226_v51 = vmul.f32 %v224_v49, %v221_v48 }
 0x288   :  { %v228_v52 = vadd.f32 %v227_v50, %v226_v51 }
 0x28a   :  { %v229_v53 = vpack.c.bf16 %v228_v52, %v228_v52  ;;  %v306_v12 = vrot.slane %v228_v52, 6 }
 0x28c   :  { %231 = vrot.lane.b32.xlu0 %v229_v53, %s1651_s13 }
 0x2fe   :  { %v232_v54 = vpop.permute.xlu0 %231 }
 0x2ff   :  { %1391 = vmatmul.mubr.msk.bf16.vlgmr.msra.gmra.mrb[4].mxu1 %vm154_vm5, %v232_v54 }
 0x300   :  { %1403 = vmatpush3.bf16.msra.mxu1 %v1713_v4  ;;  %1406 = vmatprep.mubr.msk.bf16.mxu1 %vm1650_vm0, %v1649_v1 }
 0x301   :  { %1404 = vmatprep.subr.bf16.mxu1 %v1649_v1 }
 0x304   :  { %1405 = vmatpush3.bf16.msra.mxu1 %v1715_v5 }
 0x305   :  { %1418 = vmatprep.subr.bf16.mxu1 %v1649_v1 }
 0x3d2   :  { %v270_v55 = vpop.f32.mrb[4].mxu1 }
 0x3d3   :  { %v286_v56 = vadd.f32 %v270_v55, %v1755_v24  ;;  %v1392_v57 = vpop.f32.mrb[5].mxu1  ;;  %v277_v61 = vrot.slane %v270_v55, 6 }
 0x3d4   :  { %v273_v58 = vpop.f32.mrb[6].mxu1 }
 0x3d5   :  { %v1393_v59 = vpop.f32.mrb[7].mxu1  ;;  %v288_v60 = vrot.slane %v286_v56, 6  ;;  %v279_v62 = vadd.f32 %v277_v61, %v1764_v33 }
 0x3d7   :  { %289 = vrot.lane.b32.xlu1 %v288_v60, %s1646_s28  ;;  %v1292_v63 = vmul.f32 -1.442695, %v279_v62 }
 0x3d9   :  { %1522 = vpow2.f32 %v1292_v63 }
 0x3e3   :  { %v1523_v0 = vpop.eup %1522 }
 0x3e4   :  { %v283_v2 = vadd.f32 1.0, %v1523_v0 }
 0x3e6   :  { %1524 = vrcp.f32 %v283_v2 }
 0x3f0   :  { %v1525_v3 = vpop.eup %1524 }
 0x3f1   :  { %v299_v14 = vsub.f32 1.0, %v1525_v3  ;;  %v308_v16 = vmul.f32 %v1525_v3, %v306_v12 }
 0x449   :  { %v290_v6 = vpop.permute.xlu1 %289 }
 0x44a   :  { %v292_v7 = vmul.f32 %v1525_v3, %v290_v6 }
 0x44c   :  { %294 = vrot.lane.b32.xlu0 %v292_v7, %s1646_s28 }
 0x4be   :  { %v295_v9 = vpop.permute.xlu0 %294 }
 0x4bf   :  { %v297_v10 = vadd.f32 %v295_v9, %v1764_v33 }
 0x4c1   :  { %1526 = vtanh.f32 %v297_v10 }
 0x4cb   :  { %v1527_v11 = vpop.eup %1526 }
 0x4cc   :  { %301 = vrot.lane.b32.xlu1 %v1527_v11, %s1651_s13 }
 0x53e   :  { %v302_v15 = vpop.permute.xlu1 %301 }
 0x53f   :  { %v304_v18 = vmul.f32 %v302_v15, %v299_v14 }
 0x541   :  { %v309_v19 = vadd.f32 %v308_v16, %v304_v18 }
 0x543   :  { %v310_v20 = vpack.c.bf16 %v309_v19, %v309_v19  ;;  %v388_v44 = vrot.slane %v309_v19, 6 }
 0x545   :  { %v312_v21 = vrot.slane %v310_v20, 1 }
 0x547   :  { %313 = vrot.lane.b32.xlu0 %v312_v21, %s1651_s13 }
 0x5b9   :  { %v314_v22 = vpop.permute.xlu0 %313 }
 0x5ba   :  { %1399 = vmatmul.mubr.msk.bf16.vlgmr.msra.gmra.mrb[4].mxu0 %vm154_vm5, %v314_v22 }
 0x5bb   :  { %1411 = vmatpush3.bf16.msra.mxu0 %v1713_v4  ;;  %1414 = vmatprep.mubr.msk.bf16.mxu0 %vm1650_vm0, %v1649_v1 }
 0x5bc   :  { %1412 = vmatprep.subr.bf16.mxu0 %v1649_v1 }
 0x5bf   :  { %1413 = vmatpush3.bf16.msra.mxu0 %v1715_v5 }
 0x5c0   :  { %1426 = vmatprep.subr.bf16.mxu0 %v1649_v1 }
 0x68d   :  { %v352_v23 = vpop.f32.mrb[4].mxu0 }
 0x68e   :  { %v368_v25 = vadd.f32 %v352_v23, %v1755_v24  ;;  %v1400_v26 = vpop.f32.mrb[5].mxu0  ;;  %v359_v31 = vrot.slane %v352_v23, 4 }
 0x68f   :  { %v355_v27 = vpop.f32.mrb[6].mxu0 }
 0x690   :  { %v1401_v28 = vpop.f32.mrb[7].mxu0  ;;  %v370_v29 = vrot.slane %v368_v25, 4  ;;  %v361_v32 = vadd.f32 %v359_v31, %v1764_v33 }
 0x692   :  { %371 = vrot.lane.b32.xlu1 %v370_v29, %s1646_s28  ;;  %v1294_v34 = vmul.f32 -1.442695, %v361_v32 }
 0x694   :  { %1528 = vpow2.f32 %v1294_v34 }
 0x69e   :  { %v1529_v35 = vpop.eup %1528 }
 0x69f   :  { %v365_v37 = vadd.f32 1.0, %v1529_v35 }
 0x6a1   :  { %1530 = vrcp.f32 %v365_v37 }
 0x6ab   :  { %v1531_v38 = vpop.eup %1530 }
 0x6ac   :  { %v381_v45 = vsub.f32 1.0, %v1531_v38  ;;  %v390_v47 = vmul.f32 %v1531_v38, %v388_v44 }
 0x704   :  { %v372_v39 = vpop.permute.xlu1 %371 }
 0x705   :  { %v374_v40 = vmul.f32 %v1531_v38, %v372_v39 }
 0x707   :  { %376 = vrot.lane.b32.xlu0 %v374_v40, %s1646_s28 }
 0x779   :  { %v377_v41 = vpop.permute.xlu0 %376 }
 0x77a   :  { %v379_v42 = vadd.f32 %v377_v41, %v1764_v33 }
 0x77c   :  { %1532 = vtanh.f32 %v379_v42 }
 0x786   :  { %v1533_v43 = vpop.eup %1532 }
 0x787   :  { %383 = vrot.lane.b32.xlu1 %v1533_v43, %s1651_s13 }
 0x7f9   :  { %v384_v46 = vpop.permute.xlu1 %383 }
 0x7fa   :  { %v386_v48 = vmul.f32 %v384_v46, %v381_v45 }
 0x7fc   :  { %v391_v49 = vadd.f32 %v390_v47, %v386_v48 }
 0x7fe   :  { %v392_v50 = vpack.c.bf16 %v391_v49, %v391_v49  ;;  %v470_v10 = vrot.slane %v391_v49, 6 }
 0x800   :  { %v394_v51 = vrot.slane %v392_v50, 2 }
 0x802   :  { %395 = vrot.lane.b32.xlu0 %v394_v51, %s1651_s13 }
 0x874   :  { %v396_v52 = vpop.permute.xlu0 %395 }
 0x875   :  { %1407 = vmatmul.mubr.msk.bf16.vlgmr.msra.gmra.mrb[8].mxu1 %vm154_vm5, %v396_v52 }
 0x876   :  { %1419 = vmatpush3.bf16.msra.mxu1 %v1713_v4  ;;  %1422 = vmatprep.mubr.msk.bf16.mxu1 %vm1650_vm0, %v1649_v1 }
 0x877   :  { %1420 = vmatprep.subr.bf16.mxu1 %v1649_v1 }
 0x87a   :  { %1421 = vmatpush3.bf16.msra.mxu1 %v1715_v5 }
 0x87b   :  { %1434 = vmatprep.subr.bf16.mxu1 %v1649_v1 }
 0x948   :  { %v434_v53 = vpop.f32.mrb[8].mxu1 }
 0x949   :  { %v450_v54 = vadd.f32 %v434_v53, %v1755_v24  ;;  %v1408_v55 = vpop.f32.mrb[9].mxu1  ;;  %v441_v59 = vrot.slane %v434_v53, 2 }
 0x94a   :  { %v437_v56 = vpop.f32.mrb[10].mxu1 }
 0x94b   :  { %v1409_v57 = vpop.f32.mrb[11].mxu1  ;;  %v452_v58 = vrot.slane %v450_v54, 2  ;;  %v443_v60 = vadd.f32 %v441_v59, %v1764_v33 }
 0x94d   :  { %453 = vrot.lane.b32.xlu1 %v452_v58, %s1646_s28  ;;  %v1296_v61 = vmul.f32 -1.442695, %v443_v60 }
 0x94f   :  { %1534 = vpow2.f32 %v1296_v61 }
 0x959   :  { %v1535_v62 = vpop.eup %1534 }
 0x95a   :  { %v447_v63 = vadd.f32 1.0, %v1535_v62 }
 0x95c   :  { %1536 = vrcp.f32 %v447_v63 }
 0x966   :  { %v1537_v0 = vpop.eup %1536 }
 0x967   :  { %v463_v11 = vsub.f32 1.0, %v1537_v0  ;;  %v472_v14 = vmul.f32 %v1537_v0, %v470_v10 }
 0x9bf   :  { %v454_v2 = vpop.permute.xlu1 %453 }
 0x9c0   :  { %v456_v3 = vmul.f32 %v1537_v0, %v454_v2 }
 0x9c2   :  { %458 = vrot.lane.b32.xlu0 %v456_v3, %s1646_s28 }
 0xa34   :  { %v459_v6 = vpop.permute.xlu0 %458 }
 0xa35   :  { %v461_v7 = vadd.f32 %v459_v6, %v1764_v33 }
 0xa37   :  { %1538 = vtanh.f32 %v461_v7 }
 0xa41   :  { %v1539_v9 = vpop.eup %1538 }
 0xa42   :  { %465 = vrot.lane.b32.xlu1 %v1539_v9, %s1651_s13 }
 0xab4   :  { %v466_v12 = vpop.permute.xlu1 %465 }
 0xab5   :  { %v468_v15 = vmul.f32 %v466_v12, %v463_v11 }
 0xab7   :  { %v473_v16 = vadd.f32 %v472_v14, %v468_v15 }
 0xab9   :  { %v474_v18 = vpack.c.bf16 %v473_v16, %v473_v16  ;;  %v548_v39 = vrot.slane %v473_v16, 6 }
 0xabb   :  { %v476_v19 = vrot.slane %v474_v18, 3 }
 0xabd   :  { %477 = vrot.lane.b32.xlu0 %v476_v19, %s1651_s13 }
 0xb2f   :  { %v478_v20 = vpop.permute.xlu0 %477 }
 0xb30   :  { %1415 = vmatmul.mubr.msk.bf16.vlgmr.msra.gmra.mrb[8].mxu0 %vm154_vm5, %v478_v20 }
 0xb31   :  { %1427 = vmatpush3.bf16.msra.mxu0 %v1713_v4  ;;  %1430 = vmatprep.mubr.msk.bf16.mxu0 %vm1650_vm0, %v1649_v1 }
 0xb32   :  { %1428 = vmatprep.subr.bf16.mxu0 %v1649_v1 }
 0xb35   :  { %1429 = vmatpush3.bf16.msra.mxu0 %v1715_v5 }
 0xb36   :  { %1442 = vmatprep.subr.bf16.mxu0 %v1649_v1 }
 0xc03   :  { %v516_v33 = vpop.f32.mrb[8].mxu0 }
 0xc04   :  { %v1416_v21 = vpop.f32.mrb[9].mxu0  ;;  %v529_v22 = vadd.f32 %v516_v33, %v1755_v24  ;;  %v522_v26 = vadd.f32 %v516_v33, %v1766_v36 }
 0xc05   :  { %v519_v23 = vpop.f32.mrb[10].mxu0 }
 0xc06   :  { %531 = vrot.lane.b32.xlu1 %v529_v22, %s1646_s28  ;;  %v1417_v25 = vpop.f32.mrb[11].mxu0  ;;  %v1298_v27 = vmul.f32 -1.442695, %v522_v26 }
 0xc08   :  { %1540 = vpow2.f32 %v1298_v27 }
 0xc12   :  { %v1541_v28 = vpop.eup %1540 }
 0xc13   :  { %v526_v29 = vadd.f32 1.0, %v1541_v28 }
 0xc15   :  { %1542 = vrcp.f32 %v526_v29 }
 0xc1f   :  { %v1543_v31 = vpop.eup %1542 }
 0xc20   :  { %v541_v40 = vsub.f32 1.0, %v1543_v31  ;;  %v550_v42 = vmul.f32 %v1543_v31, %v548_v39 }
 0xc78   :  { %v532_v32 = vpop.permute.xlu1 %531 }
 0xc79   :  { %v534_v34 = vmul.f32 %v1543_v31, %v532_v32 }
 0xc7b   :  { %536 = vrot.lane.b32.xlu0 %v534_v34, %s1646_s28 }
 0xced   :  { %v537_v35 = vpop.permute.xlu0 %536 }
 0xcee   :  { %v539_v37 = vadd.f32 %v537_v35, %v1766_v36 }
 0xcf0   :  { %1544 = vtanh.f32 %v539_v37 }
 0xcfa   :  { %v1545_v38 = vpop.eup %1544 }
 0xcfb   :  { %543 = vrot.lane.b32.xlu1 %v1545_v38, %s1651_s13 }
 0xd6d   :  { %v544_v41 = vpop.permute.xlu1 %543 }
 0xd6e   :  { %v546_v43 = vmul.f32 %v544_v41, %v541_v40 }
 0xd70   :  { %v551_v44 = vadd.f32 %v550_v42, %v546_v43 }
 0xd72   :  { %v552_v45 = vpack.c.bf16 %v551_v44, %v551_v44  ;;  %v629_v62 = vrot.slane %v551_v44, 6 }
 0xd74   :  { %554 = vrot.lane.b32.xlu0 %v552_v45, %s1651_s13 }
 0xde6   :  { %v555_v46 = vpop.permute.xlu0 %554 }
 0xde7   :  { %1423 = vmatmul.mubr.msk.bf16.vlgmr.msra.gmra.mrb[12].mxu1 %vm154_vm5, %v555_v46 }
 0xde8   :  { %1435 = vmatpush3.bf16.msra.mxu1 %v1713_v4  ;;  %1438 = vmatprep.mubr.msk.bf16.mxu1 %vm1650_vm0, %v1649_v1 }
 0xde9   :  { %1436 = vmatprep.subr.bf16.mxu1 %v1649_v1 }
 0xdec   :  { %1437 = vmatpush3.bf16.msra.mxu1 %v1715_v5 }
 0xded   :  { %1452 = vmatprep.subr.bf16.mxu1 %v1649_v1 }
 0xeba   :  { %v593_v47 = vpop.f32.mrb[12].mxu1 }
 0xebb   :  { %v609_v48 = vadd.f32 %v593_v47, %v1755_v24  ;;  %v1424_v49 = vpop.f32.mrb[13].mxu1  ;;  %v600_v53 = vrot.slane %v593_v47, 6 }
 0xebc   :  { %v596_v50 = vpop.f32.mrb[14].mxu1 }
 0xebd   :  { %v1425_v51 = vpop.f32.mrb[15].mxu1  ;;  %v611_v52 = vrot.slane %v609_v48, 6  ;;  %v602_v4 = vadd.f32 %v600_v53, %v1766_v36 }
 0xebf   :  { %612 = vrot.lane.b32.xlu1 %v611_v52, %s1646_s28  ;;  %v1300_v54 = vmul.f32 -1.442695, %v602_v4 }
 0xec1   :  { %1546 = vpow2.f32 %v1300_v54 }
 0xecb   :  { %v1547_v55 = vpop.eup %1546 }
 0xecc   :  { %v606_v56 = vadd.f32 1.0, %v1547_v55 }
 0xece   :  { %1548 = vrcp.f32 %v606_v56  ;;  %v1503_v56 = vld [vmem:[#allocation2 + $0x30] sm:$0xff]  }
 0xed8   :  { %v1549_v5 = vpop.eup %1548 }
 0xed9   :  { %v622_v63 = vsub.f32 1.0, %v1549_v5  ;;  %v631_v2 = vmul.f32 %v1549_v5, %v629_v62 }
 0xf31   :  { %v613_v57 = vpop.permute.xlu1 %612 }
 0xf32   :  { %v615_v58 = vmul.f32 %v1549_v5, %v613_v57  ;;  %v1504_v5 = vld [vmem:[#allocation2 + $0x38] sm:$0xff]  }
 0xf34   :  { %617 = vrot.lane.b32.xlu0 %v615_v58, %s1646_s28  ;;  %v1506_v58 = vld [vmem:[#allocation2 + $0x40] sm:$0xff]  }
 0xfa6   :  { %v618_v59 = vpop.permute.xlu0 %617 }
 0xfa7   :  { %v620_v60 = vadd.f32 %v618_v59, %v1766_v36 }
 0xfa9   :  { %1550 = vtanh.f32 %v620_v60 }
 0xfb3   :  { %v1551_v61 = vpop.eup %1550 }
 0xfb4   :  { %624 = vrot.lane.b32.xlu1 %v1551_v61, %s1651_s13 }
0x1026   :  { %v625_v0 = vpop.permute.xlu1 %624 }
0x1027   :  { %v627_v3 = vmul.f32 %v625_v0, %v622_v63 }
0x1029   :  { %v632_v6 = vadd.f32 %v631_v2, %v627_v3  ;;  %v1868_v2 = vld [vmem:[%s1945_s1] sm:$0xf]  ;;  %v1873_v3 = vld [vmem:[%s1945_s1 + $0x4] sm:$0xf]  ;;  %s1483_s1 = spop %1482 }
0x102b   :  { %v633_v7 = vpack.c.bf16 %v632_v6, %v632_v6  ;;  %v711_v31 = vrot.slane %v632_v6, 6  ;;  %v801_v6 = vcombine.low %v1868_v2, %v1873_v3 }
0x102d   :  { %v635_v9 = vrot.slane %v633_v7, 1  ;;  %v804_v7 = vsel %vm803_vm6, %v801_v6, 0.0 }
0x102f   :  { %636 = vrot.lane.b32.xlu0 %v635_v9, %s1651_s13 }
0x10a1   :  { %v637_v10 = vpop.permute.xlu0 %636 }
0x10a2   :  { %1431 = vmatmul.mubr.msk.bf16.vlgmr.msra.gmra.mrb[12].mxu0 %vm154_vm5, %v637_v10 }
0x10a3   :  { %1448 = vmatprep.mubr.msk.bf16.mxu0 %vm1650_vm0, %v1649_v1  ;;  %1443 = vmatpush3.bf16.msra.mxu0 %v1503_v56 }
0x10a4   :  { %1444 = vmatprep.subr.bf16.mxu0 %v1649_v1 }
0x10a7   :  { %1445 = vmatpush3.bf16.msra.mxu0 %v1504_v5 }
0x10a8   :  { %1446 = vmatprep.subr.bf16.mxu0 %v1649_v1 }
0x10ab   :  { %1447 = vmatpush3.bf16.msra.mxu0 %v1506_v58 }
0x10ac   :  { %1462 = vmatprep.subr.bf16.mxu0 %v1649_v1 }
0x1175   :  { %v675_v11 = vpop.f32.mrb[12].mxu0 }
0x1176   :  { %v691_v12 = vadd.f32 %v675_v11, %v1755_v24  ;;  %v1432_v14 = vpop.f32.mrb[13].mxu0  ;;  %v682_v19 = vrot.slane %v675_v11, 4 }
0x1177   :  { %v678_v15 = vpop.f32.mrb[14].mxu0  ;;  %v1653_v14 = vmov 1966171168  }
0x1178   :  { %v1433_v16 = vpop.f32.mrb[15].mxu0  ;;  %v693_v18 = vrot.slane %v691_v12, 4  ;;  %v684_v20 = vadd.f32 %v682_v19, %v1766_v36  ;;  %v889_v12 = vsub.s32 3, %v1719_v8  ;;  %v898_v15 = vunpack.c.l.s4 %v1653_v14 }
0x1179   :  { %v883_v16 = vsub.s32 2, %v1719_v8 }
0x117a   :  { %694 = vrot.lane.b32.xlu1 %v693_v18, %s1646_s28  ;;  %v1302_v33 = vmul.f32 -1.442695, %v684_v20  ;;  %v890_v18 = vrot.slane %v1728_v13, %v889_v12  ;;  %v899_v19 = vunpack.c.0.s8 %v898_v15 }
0x117c   :  { %1552 = vpow2.f32 %v1302_v33  ;;  %v884_v33 = vrot.slane %v1728_v13, %v883_v16 }
0x1186   :  { %v1553_v21 = vpop.eup %1552 }
0x1187   :  { %v688_v22 = vadd.f32 1.0, %v1553_v21 }
0x1189   :  { %1554 = vrcp.f32 %v688_v22 }
0x1193   :  { %v1555_v23 = vpop.eup %1554 }
0x1194   :  { %v704_v32 = vsub.f32 1.0, %v1555_v23  ;;  %v713_v35 = vmul.f32 %v1555_v23, %v711_v31 }
0x11ec   :  { %v695_v25 = vpop.permute.xlu1 %694 }
0x11ed   :  { %v697_v26 = vmul.f32 %v1555_v23, %v695_v25  ;;  %v902_v25 = vsub.s32 %v899_v19, %v1719_v8 }
0x11ef   :  { %699 = vrot.lane.b32.xlu0 %v697_v26, %s1646_s28 }
0x1261   :  { %v700_v27 = vpop.permute.xlu0 %699 }
0x1262   :  { %v702_v28 = vadd.f32 %v700_v27, %v1766_v36 }
0x1264   :  { %1556 = vtanh.f32 %v702_v28 }
0x126e   :  { %v1557_v29 = vpop.eup %1556 }
0x126f   :  { %706 = vrot.lane.b32.xlu1 %v1557_v29, %s1651_s13 }
0x12e1   :  { %v707_v34 = vpop.permute.xlu1 %706 }
0x12e2   :  { %v709_v37 = vmul.f32 %v707_v34, %v704_v32 }
0x12e4   :  { %v714_v38 = vadd.f32 %v713_v35, %v709_v37 }
0x12e6   :  { %v715_v39 = vpack.c.bf16 %v714_v38, %v714_v38  ;;  %v793_v59 = vrot.slane %v714_v38, 6 }
0x12e8   :  { %v717_v40 = vrot.slane %v715_v39, 2 }
0x12ea   :  { %718 = vrot.lane.b32.xlu0 %v717_v40, %s1651_s13 }
0x135c   :  { %v719_v41 = vpop.permute.xlu0 %718 }
0x135d   :  { %1439 = vmatmul.mubr.msk.bf16.vlgmr.msra.gmra.mrb[16].mxu1 %vm154_vm5, %v719_v41 }
0x135e   :  { %1458 = vmatprep.mubr.msk.bf16.mxu1 %vm1650_vm0, %v1649_v1 }
0x1430   :  { %v757_v42 = vpop.f32.mrb[16].mxu1 }
0x1431   :  { %v773_v43 = vadd.f32 %v757_v42, %v1755_v24  ;;  %v1440_v44 = vpop.f32.mrb[17].mxu1  ;;  %v764_v48 = vrot.slane %v757_v42, 2 }
0x1432   :  { %v760_v45 = vpop.f32.mrb[18].mxu1 }
0x1433   :  { %v1441_v46 = vpop.f32.mrb[19].mxu1  ;;  %v775_v47 = vrot.slane %v773_v43, 2  ;;  %v766_v49 = vadd.f32 %v764_v48, %v1766_v36 }
0x1434   :  { %v1507_v46 = vld [vmem:[#allocation2 + $0x48] sm:$0xff]  }
0x1435   :  { %776 = vrot.lane.b32.xlu1 %v775_v47, %s1646_s28  ;;  %v1304_v50 = vmul.f32 -1.442695, %v766_v49  ;;  %1453 = vmatpush3.bf16.msra.mxu1 %v1507_v46  ;;  %v1508_v47 = vld [vmem:[#allocation2 + $0x50] sm:$0xff]  }
0x1436   :  { %1454 = vmatprep.subr.bf16.mxu1 %v1649_v1 }
0x1437   :  { %1558 = vpow2.f32 %v1304_v50 }
0x1439   :  { %1455 = vmatpush3.bf16.msra.mxu1 %v1508_v47 }
0x143a   :  { %1456 = vmatprep.subr.bf16.mxu1 %v1649_v1 }
0x1441   :  { %v1559_v51 = vpop.eup %1558 }
0x1442   :  { %v770_v52 = vadd.f32 1.0, %v1559_v51 }
0x1444   :  { %1560 = vrcp.f32 %v770_v52 }
0x144e   :  { %v1561_v53 = vpop.eup %1560 }
0x144f   :  { %v786_v60 = vsub.f32 1.0, %v1561_v53 }
0x14a7   :  { %v777_v4 = vpop.permute.xlu1 %776 }
0x14a8   :  { %v779_v54 = vmul.f32 %v1561_v53, %v777_v4 }
0x14aa   :  { %781 = vrot.lane.b32.xlu0 %v779_v54, %s1646_s28 }
0x151c   :  { %v782_v24 = vpop.permute.xlu0 %781 }
0x151d   :  { %v784_v55 = vadd.f32 %v782_v24, %v1766_v36  ;;  %v795_v36 = vmul.f32 %v1561_v53, %v793_v59 }
0x151f   :  { %1562 = vtanh.f32 %v784_v55 }
0x1529   :  { %v1563_v57 = vpop.eup %1562 }
0x152a   :  { %788 = vrot.lane.b32.xlu1 %v1563_v57, %s1651_s13 }
0x159c   :  { %v789_v61 = vpop.permute.xlu1 %788 }
0x159d   :  { %v791_v62 = vmul.f32 %v789_v61, %v786_v60 }
0x159f   :  { %v796_v63 = vadd.f32 %v795_v36, %v791_v62 }
0x15a1   :  { %v806_v0 = vrot.slane %v796_v63, 6 }
0x15a3   :  { %807 = vrot.lane.b32.xlu0 %v806_v0, %s1652_s14 }
0x1615   :  { %v808_v9 = vpop.permute.xlu0 %807 }
0x1616   :  { %v810_v10 = vsel %vm803_vm6, 0.0, %v808_v9 }
0x1617   :  { %v817_v11 = vpack.c.bf16 %v810_v10, %v804_v7 }
0x1619   :  { %1449 = vmatmul.mubr.msk.bf16.vlgmr.msra.gmra.mrb[16].mxu0 %vm836_vm7, %v817_v11 }
0x161a   :  { %1466 = vmatprep.mubr.msk.bf16.mxu0 %vm1650_vm0, %v1649_v1 }
0x16ec   :  { %v874_v20 = vpop.f32.mrb[16].mxu0 }
0x16ed   :  { %v1450_v21 = vpop.f32.mrb[17].mxu0  ;;  %v885_v27 = vadd.f32 %v884_v33, %v874_v20 }
0x16ee   :  { %v877_v22 = vpop.f32.mrb[18].mxu0 }
0x16ef   :  { %v891_v23 = vadd.f32 %v890_v18, %v877_v22  ;;  %v1451_v26 = vpop.f32.mrb[19].mxu0  ;;  %v886_v31 = vmax.f32 %v885_v27, 0.0 }
0x16f1   :  { %v892_v28 = vmax.f32 %v891_v23, 0.0  ;;  %v894_v38 = vcombine.high %v886_v31, %v886_v31 }
0x16f3   :  { %v903_v29 = vrot.slane %v892_v28, %v902_v25 }
0x16f5   :  { %v904_v32 = vcombine.high %v903_v29, %v903_v29  ;;  %v911_v34 = vrot.slane %v903_v29, %v902_v25 }
0x16f7   :  { %v918_v35 = vrot.slane %v904_v32, %v902_v25  ;;  %v922_v37 = vrot.slane %v911_v34, %v1760_v30 }
0x16f9   :  { %v929_v39 = vmul.f32 %v922_v37, %v886_v31  ;;  %v926_v40 = vrot.slane %v918_v35, %v1760_v30  ;;  %v944_v30 = vstv %s1483_s1 }
0x16fb   :  { %v935_v41 = vmul.f32 %v1736_v17, %v929_v39  ;;  %v930_v42 = vmul.f32 %v926_v40, %v894_v38  ;;  %v1509_v39 = vld [vmem:[#allocation2 + $0x58] sm:$0xff]  }
0x16fc   :  { %1457 = vmatpush3.bf16.msra.mxu1 %v1509_v39 }
0x16fd   :  { %v937_v43 = vsel %vm89_vm1, %v935_v41, 0.0  ;;  %v936_v44 = vmul.f32 %v1736_v17, %v930_v42  ;;  %1470 = vmatprep.subr.bf16.mxu1 %v1649_v1 }
0x16fe   :  { %938 = vadd.xlane.f32.xlu1 %v937_v43 }
0x16ff   :  { %v940_v45 = vsel %vm89_vm1, %v936_v44, 0.0 }
0x1700   :  { %941 = vadd.xlane.f32.xlu0 %v940_v45 }
0x1716   :  { %1002 = vrot.lane.b32.xlu0 %v796_v63, %s1651_s13 }
0x178b   :  { %v939_v48 = vpop.xlane.xlu1 %938 }
0x178c   :  { %v945_v49 = vadd.f32 %v944_v30, %v939_v48 }
0x178d   :  { %v942_v50 = vpop.xlane.xlu0 %941 }
0x178e   :  { %v947_v17 = vsel %vm89_vm1, %v945_v49, -inf  ;;  %v946_v51 = vadd.f32 %v944_v30, %v942_v50 }
0x178f   :  { %v948_v52 = vrot.slane %v947_v17, 4 }
0x1790   :  { %v954_v53 = vsel %vm89_vm1, %v946_v51, -inf }
0x1791   :  { %v949_v4 = vmax.f32 %v947_v17, %v948_v52  ;;  %v955_v54 = vrot.slane %v954_v53, 4  ;;  %v1003_v30 = vpop.permute.xlu0 %1002 }
0x1792   :  { %v1005_v48 = vsel %vm154_vm5, %v1003_v30, 0.0 }
0x1793   :  { %v950_v24 = vrot.slane %v949_v4, 2  ;;  %v956_v55 = vmax.f32 %v954_v53, %v955_v54  ;;  %v1015_v17 = vrot.slane %v1005_v48, 6  ;;  %v1511_v54 = vld [vmem:[#allocation2 + $0x68] sm:$0xff]  }
0x1795   :  { %v951_v56 = vmax.f32 %v949_v4, %v950_v24  ;;  %v957_v5 = vrot.slane %v956_v55, 2  ;;  %v1510_v4 = vld [vmem:[#allocation2 + $0x60] sm:$0xff]   ;;  %v1512_v24 = vld [vmem:[#allocation2 + $0x70] sm:$0xff]  }
0x1796   :  { %1463 = vmatpush3.bf16.msra.mxu0 %v1510_v4 }
0x1797   :  { %v952_v57 = vrot.slane %v951_v56, 1  ;;  %v958_v58 = vmax.f32 %v956_v55, %v957_v5  ;;  %1464 = vmatprep.subr.bf16.mxu0 %v1649_v1  ;;  %v1513_v55 = vld [vmem:[#allocation2 + $0x78] sm:$0xff]   ;;  %v1098_v5 = vsub.s32 5, %v1719_v8 }
0x1799   :  { %v953_v59 = vmax.f32 %v951_v56, %v952_v57  ;;  %v959_v60 = vrot.slane %v958_v58, 1  ;;  %v1092_v56 = vsub.s32 4, %v1719_v8 }
0x179a   :  { %1465 = vmatpush3.bf16.msra.mxu0 %v1511_v54 }
0x179b   :  { %v961_v61 = vsub.f32 %v945_v49, %v953_v59  ;;  %v960_v36 = vmax.f32 %v958_v58, %v959_v60  ;;  %v1093_v57 = vrot.slane %v1728_v13, %v1092_v56  ;;  %v1099_v58 = vrot.slane %v1728_v13, %v1098_v5 }
0x179c   :  { %v1121_v13 = vsub.s32 6, %v1719_v8 }
0x179d   :  { %v963_v62 = vmul.f32 1.442695, %v961_v61  ;;  %v962_v63 = vsub.f32 %v946_v51, %v960_v36 }
0x179f   :  { %1564 = vpow2.f32 %v963_v62  ;;  %v965_v0 = vmul.f32 1.442695, %v962_v63 }
0x17a1   :  { %1566 = vpow2.f32 %v965_v0 }
0x17a9   :  { %v1565_v6 = vpop.eup %1564 }
0x17aa   :  { %v967_v7 = vsel %vm89_vm1, %v1565_v6, 0.0 }
0x17ab   :  { %v1567_v9 = vpop.eup %1566  ;;  %v968_v10 = vrot.slane %v967_v7, 4 }
0x17ac   :  { %v974_v11 = vsel %vm89_vm1, %v1567_v9, 0.0 }
0x17ad   :  { %v969_v12 = vadd.f32 %v968_v10, %v967_v7  ;;  %v975_v14 = vrot.slane %v974_v11, 4 }
0x17af   :  { %v970_v15 = vrot.slane %v969_v12, 2  ;;  %v976_v16 = vadd.f32 %v975_v14, %v974_v11  ;;  %v1514_v11 = vld [vmem:[#allocation2 + $0x80] sm:$0xff]  }
0x17b0   :  { %v1572_v14 = vld [vmem:[%s1947_s3] sm:$0xff] }
0x17b1   :  { %v971_v18 = vadd.f32 %v970_v15, %v969_v12  ;;  %v977_v19 = vrot.slane %v976_v16, 2  ;;  %v1515_v12 = vld [vmem:[#allocation2 + $0x88] sm:$0xff]   ;;  %v1122_v15 = vrot.slane %v1572_v14, %v1121_v13 }
0x17b3   :  { %v972_v20 = vrot.slane %v971_v18, 1  ;;  %v978_v33 = vadd.f32 %v977_v19, %v976_v16 }
0x17b5   :  { %v973_v21 = vadd.f32 %v972_v20, %v971_v18  ;;  %v979_v22 = vrot.slane %v978_v33, 1 }
0x17b7   :  { %1568 = vrcp.f32 %v973_v21  ;;  %v980_v23 = vadd.f32 %v979_v22, %v978_v33 }
0x17b9   :  { %1570 = vrcp.f32 %v980_v23 }
0x17c1   :  { %v1569_v25 = vpop.eup %1568 }
0x17c2   :  { %v982_v26 = vmul.f32 %v1569_v25, %v1565_v6 }
0x17c3   :  { %v1571_v27 = vpop.eup %1570 }
0x17c4   :  { %v984_v28 = vmul.f32 %v1571_v27, %v1567_v9  ;;  %v985_v29 = vmul.f32 %v982_v26, %v1868_v2 }
0x17c6   :  { %v986_v31 = vmul.f32 %v984_v28, %v1873_v3  ;;  %v988_v32 = vsel %vm987_vm8, %v985_v29, 0.0 }
0x17c7   :  { %v989_v34 = vrot.slane %v988_v32, 4 }
0x17c8   :  { %v995_v35 = vsel %vm987_vm8, %v986_v31, 0.0 }
0x17c9   :  { %v990_v37 = vadd.f32 %v989_v34, %v988_v32  ;;  %v996_v38 = vrot.slane %v995_v35, 4 }
0x17cb   :  { %v991_v40 = vrot.slane %v990_v37, 2  ;;  %v997_v41 = vadd.f32 %v996_v38, %v995_v35 }
0x17cd   :  { %v992_v42 = vadd.f32 %v991_v40, %v990_v37  ;;  %v998_v43 = vrot.slane %v997_v41, 2 }
0x17cf   :  { %v993_v44 = vrot.slane %v992_v42, 1  ;;  %v999_v45 = vadd.f32 %v998_v43, %v997_v41 }
0x17d1   :  { %v1000_v46 = vrot.slane %v999_v45, 1  ;;  %v994_v2 = vadd.f32 %v993_v44, %v992_v42 }
0x17d3   :  { %v1001_v47 = vadd.f32 %v1000_v46, %v999_v45 }
0x17d5   :  { %v1009_v3 = vsel %vm1008_vm9, %v1001_v47, %v994_v2 }
0x17d6   :  { %1010 = vrot.lane.b32.xlu1 %v1009_v3, %s1654_s19 }
0x1848   :  { %v1011_v49 = vpop.permute.xlu1 %1010 }
0x1849   :  { %v1013_v50 = vsel %vm154_vm5, 0.0, %v1011_v49 }
0x184a   :  { %v1018_v51 = vrot.slane %v1013_v50, 6 }
0x184c   :  { %v1021_v52 = vsel %vm1020_vm10, %v1015_v17, %v1018_v51 }
0x184d   :  { %v1028_v53 = vpack.c.bf16 %v1021_v52, %v1021_v52 }
0x184f   :  { %1459 = vmatmul.mubr.msk.bf16.vlgmr.msra.gmra.mrb[20].mxu1 %vm836_vm7, %v1028_v53 }
0x1850   :  { %1478 = vmatprep.mubr.msk.bf16.mxu1 %vm1650_vm0, %v1649_v1  ;;  %1471 = vmatpush3.bf16.msra.mxu1 %v1512_v24 }
0x1851   :  { %1472 = vmatprep.subr.bf16.mxu1 %v1649_v1 }
0x1854   :  { %1473 = vmatpush3.bf16.msra.mxu1 %v1513_v55 }
0x1855   :  { %1474 = vmatprep.subr.bf16.mxu1 %v1649_v1 }
0x1858   :  { %1475 = vmatpush3.bf16.msra.mxu1 %v1514_v11 }
0x1859   :  { %1476 = vmatprep.subr.bf16.mxu1 %v1649_v1 }
0x185c   :  { %1477 = vmatpush3.bf16.msra.mxu1 %v1515_v12 }
0x1922   :  { %v1084_v59 = vpop.f32.mrb[20].mxu1 }
0x1923   :  { %v1094_v60 = vadd.f32 %v1093_v57, %v1084_v59  ;;  %v1100_v61 = vadd.f32 %v1099_v58, %v1084_v59  ;;  %v1460_v36 = vpop.f32.mrb[21].mxu1 }
0x1924   :  { %v1087_v62 = vpop.f32.mrb[22].mxu1 }
0x1925   :  { %v1101_v63 = vmax.f32 %v1100_v61, 0.0  ;;  %v1461_v0 = vpop.f32.mrb[23].mxu1  ;;  %v1095_v6 = vmax.f32 %v1094_v60, 0.0 }
0x1927   :  { %v1103_v7 = vrot.slane %v1101_v63, 2 }
0x1929   :  { %v1105_v9 = vmul.f32 %v1103_v7, %v1095_v6 }
0x192b   :  { %v1118_v10 = vpack.c.bf16 %v1105_v9, %v1105_v9  ;;  %1253 = vst [vmem:[#allocation6] sm:$0x3] %v1105_v9 }
0x192d   :  { %1467 = vmatmul.mubr.msk.bf16.vlgmr.msra.gmra.mrb[20].mxu0 %vm154_vm5, %v1118_v10 }
0x1a00   :  { %v1172_v16 = vpop.f32.mrb[20].mxu0 }
0x1a01   :  { %v1173_v18 = vadd.f32 %v1172_v16, %v1122_v15  ;;  %v1468_v19 = vpop.f32.mrb[21].mxu0 }
0x1a02   :  { %v1175_v20 = vpop.f32.mrb[22].mxu0 }
0x1a03   :  { %v1178_v33 = vmax.f32 %v1173_v18, 0.0  ;;  %v1469_v21 = vpop.f32.mrb[23].mxu0 }
0x1a05   :  { %v1179_v22 = vpack.c.bf16 %v1178_v33, %v1178_v33 }
0x1a07   :  { %1479 = vmatmul.mubr.msk.bf16.vlgmr.msra.gmra.mrb[24].mxu1 %vm1208_vm11, %v1179_v22 }
0x1a08   :  { %1606 = shalt.err (!%p1603_p12)
}
0x1a09   :  { %s1607_s26 = scalar_lea.hbm %s1949_s5, 32 }
0x1a0a   :  { %p1608_p13 = scmp.ne.s32.totalorder %s1949_s5, %s1607_s26  ;;  %p1611_p0 = scmp.lt.u32.totalorder %s1607_s26, %s1949_s5 }
0x1a0c   :  { %p1613_p1 = pnand %p1611_p0, %p1608_p13 }
0x1a0e   :  { %1616 = shalt.err (!%p1613_p1)
}
0x1a0f   :  { %1273 = dma.vmem_to_hbm [thread:$0]  %s1271_s23, 32, %s1949_s5, [#allocation7]   ;;  %v1182_v1 = vsub.s32 7, %v1719_v8 }
0x1a10   :  { %s1656_s8 = smov [#allocation5]  }
0x1a11   :  { %v1183_v23 = vrot.slane %v1572_v14, %v1182_v1  ;;  %s1260_s2 = sshll.u32 %s1656_s8, 4  ;;  %s1261_s2 = int_to_ptr.vmem [resolvable:$true] %s1260_s2 }
0x1a12   :  { %s1617_s9 = scalar_lea.vmem %s1261_s2, 32  ;;  %p1622_p3 = scmp.lt.s32.totalorder %s1261_s2, %s1261_s2 }
0x1a13   :  { %p1618_p2 = scmp.ne.s32.totalorder %s1261_s2, %s1617_s9  ;;  %p1623_p4 = scmp.lt.s32.totalorder %s1617_s9, %s1617_s9 }
0x1a15   :  { %p1624_p5 = por %p1623_p4, %p1622_p3 }
0x1a17   :  { %p1625_p6 = pnand %p1624_p5, %p1618_p2 }
0x1ada   :  { %v1246_v25 = vpop.f32.mrb[24].mxu1 }
0x1adb   :  { %v1247_v26 = vadd.f32 %v1246_v25, %v1183_v23  ;;  %v1480_v27 = vpop.f32.mrb[25].mxu1 }
0x1adc   :  { %v1249_v28 = vpop.f32.mrb[26].mxu1 }
0x1add   :  { %1252 = vst [vmem:[#allocation5] sm:$0x3] %v1247_v26  ;;  %v1481_v29 = vpop.f32.mrb[27].mxu1 }
0x1ade   :  { %1628 = shalt.err (!%p1625_p6)
}
0x1adf   :  { %s1629_s10 = scalar_lea.hbm %s1948_s4, 32 }
0x1ae0   :  { %p1630_p7 = scmp.ne.s32.totalorder %s1948_s4, %s1629_s10  ;;  %p1633_p8 = scmp.lt.u32.totalorder %s1629_s10, %s1948_s4 }
0x1ae2   :  { %p1635_p9 = pnand %p1633_p8, %p1630_p7 }
0x1ae4   :  { %1638 = shalt.err (!%p1635_p9)
}
0x1ae5   :  { %1263 = dma.vmem_to_hbm [thread:$0]  %s1261_s2, 32, %s1948_s4, [#allocation4]  }
0x1ae6   :  { %1641 = dma.done.wait [#allocation4], 32  }
0x1ae7   :  { %1642 = vsyncadd [#allocation4], 4294967264 }
0x1ae8   :  { %1643 = dma.done.wait [#allocation7], 32  }
0x1ae9   :  { %1644 = vsyncadd [#allocation7], 4294967264 }
0x1aea   :  { %1280 = vsyncpa [#allocation3], 1 }
0x1aeb   :  { %1281 = vsyncpa [#allocation4], 1 }
0x1aec   :  { %1282 = vsyncpa [#allocation7], 1 }

</bundles_post_ra>
